<compile_context>
chip_gen: v7x
topology: tpu7x:2x2x1
jax: 0.10.0
libtpu: 0.0.40
codegen_flags: <defaults>
</compile_context>

<pallas_src>
import functools

import jax
import jax.numpy as jnp
from jax.experimental import pallas as pl
from jax.experimental.pallas import tpu as pltpu


def _vmem_limit_bytes():
    """Generation-aware scoped-VMEM cap."""
    try:
        cap = int(pltpu.get_tpu_info().vmem_capacity_bytes)
    except Exception:
        cap = 64 * 1024 * 1024  # conservative fallback (v7x per-TC physical)
    if cap <= 64 * 1024 * 1024:            # v7x-class: 64 MiB physical per TC
        return min(cap // 2, 32 * 1024 * 1024)
    return min(cap * 3 // 4, 96 * 1024 * 1024)   # v5e/v6e: 128 MiB physical


# ------------------------------ fused kernels --------------------------------

def _sepconv_kernel(xp_ref, dw_ref, pw_ref, o_ref, *scratch, k, nb, ho, wo):
    """Depthwise kxk (stride 1) + pointwise 1x1 for one (batch-block, C_out tile).

    xp_ref : (nb, Hp, Wp, Cin)  zero-padded input, bf16
    dw_ref : (k*k, Cin)         depthwise weights, f32
    pw_ref : (Cin, Tco)         pointwise weight tile, bf16
    o_ref  : (nb, Ho, Wo, Tco)  output tile, f32
    scratch: optional (nb*Ho*Wo, Cin) bf16 VMEM buffer caching the depthwise
             result when there is more than one C_out tile.
    """
    cin = xp_ref.shape[-1]

    def depthwise():
        xp = xp_ref[...].astype(jnp.float32)   # f32 VPU math (no bf16 VALU on v5e)
        w = dw_ref[...]                        # (k*k, Cin)
        acc = jnp.zeros((nb, ho, wo, cin), jnp.float32)
        for dy in range(k):
            for dx in range(k):
                # TODO(synk): at production Xception spatial sizes (wo % 8 != 0),
                # pad wo to a multiple of 8 and move the misaligned W-axis
                # shifts to pltpu.roll (XLU) to avoid per-step relayout copies.
                acc = acc + xp[:, dy:dy + ho, dx:dx + wo, :] * w[dy * k + dx]
        return acc.reshape(nb * ho * wo, cin).astype(jnp.bfloat16)

    if scratch:
        # Multiple C_out tiles: compute the depthwise pass once per batch block
        # (co == 0) and reuse it across tiles.  Correct ONLY while the C_out
        # grid axis stays the innermost, sequential ("arbitrary") axis.
        dw_vmem, = scratch

        @pl.when(pl.program_id(1) == 0)
        def _():
            dw_vmem[...] = depthwise()

        lhs = dw_vmem[...]
    else:
        lhs = depthwise()                      # single C_out tile: fully fused

    out = jnp.dot(lhs, pw_ref[...], preferred_element_type=jnp.float32)
    o_ref[...] = out.reshape(nb, ho, wo, -1).astype(o_ref.dtype)


def _pointwise_kernel(x_ref, pw_ref, o_ref, *, nb, ho, wo):
    """k == 1 path: depthwise weight folded into pw -> one MXU matmul."""
    cin = x_ref.shape[-1]
    lhs = x_ref[...].reshape(nb * ho * wo, cin)            # bf16 MXU operand
    out = jnp.dot(lhs, pw_ref[...], preferred_element_type=jnp.float32)
    o_ref[...] = out.reshape(nb, ho, wo, -1).astype(o_ref.dtype)


# -------------------------------- wrapper ------------------------------------

def separable_conv2d(x, dw_w, pw_w, *, k, s=1, p=0):
    """x: (N, H, W, Cin) f32 NHWC; dw_w: (k, k, Cin); pw_w: (Cin, Cout)."""
    if s != 1:
        # TODO(synk): stride > 1 depthwise not implemented (module default and
        # the Xception SeparableConv2d usage here are both stride 1).
        raise NotImplementedError("stride != 1 not supported")
    n, h, w, cin = x.shape
    cout = pw_w.shape[1]
    ho = h + 2 * p - k + 1
    wo = w + 2 * p - k + 1

    xp = jnp.pad(x, ((0, 0), (p, p), (p, p), (0, 0))) if p else x
    xp = xp.astype(jnp.bfloat16)               # halves the input DMA stream
    hp, wp = xp.shape[1], xp.shape[2]

    # Lane-dense, MXU-width C_out tiling: pad C_out to a multiple of 128, use
    # 256-wide tiles when possible (v6e/v7x MXU is 256 wide).
    cout_p = ((cout + 127) // 128) * 128
    pw_eff = pw_w
    if k == 1:                                 # fold depthwise into pointwise
        pw_eff = dw_w.reshape(cin, 1).astype(jnp.float32) * pw_w
    if cout_p != cout:
        pw_eff = jnp.pad(pw_eff, ((0, 0), (0, cout_p - cout)))
    pw_bf16 = pw_eff.astype(jnp.bfloat16)
    tco = 256 if cout_p % 256 == 0 else 128
    assert cout_p % tco == 0, (cout_p, tco)
    nco = cout_p // tco
    use_scratch = (k > 1) and (nco > 1)

    vmem_limit = _vmem_limit_bytes()

    # Batch blocking: largest nb that divides N, fits the VMEM budget, and keeps
    # >= 2 steps on the parallel batch axis (both v7x TensorCores get work).
    # TODO(synk): for production Xception feature maps on v7x (64 MiB VMEM),
    # add an H-tile grid axis with a (k-1)-row halo instead of whole images.
    def step_bytes(nb):
        b = 2 * nb * hp * wp * cin * 2                      # xp (bf16, x2 bufs)
        b += 2 * nb * ho * wo * tco * 4                     # out (f32, x2 bufs)
        b += 2 * cin * tco * 2 + 2 * k * k * cin * 4        # weights (x2 bufs)
        b += nb * ho * wo * cin * (2 if use_scratch else 4) # scratch / live dw
        return b

    nb = 1
    for cand in range(n, 0, -1):
        if n % cand:
            continue
        if n >= 2 and n // cand < 2:
            continue
        if step_bytes(cand) <= (vmem_limit * 3) // 4:
            nb = cand
            break

    grid = (n // nb, nco)
    x_spec = pl.BlockSpec((nb, hp, wp, cin), lambda b, co: (b, 0, 0, 0))
    pw_spec = pl.BlockSpec((cin, tco), lambda b, co: (0, co))
    out_spec = pl.BlockSpec((nb, ho, wo, tco), lambda b, co: (b, 0, 0, co))

    if k == 1:
        kernel = functools.partial(_pointwise_kernel, nb=nb, ho=ho, wo=wo)
        in_specs = [x_spec, pw_spec]
        args = (xp, pw_bf16)
        scratch_shapes = []
    else:
        kernel = functools.partial(_sepconv_kernel, k=k, nb=nb, ho=ho, wo=wo)
        dw_flat = dw_w.reshape(k * k, cin).astype(jnp.float32)
        dw_spec = pl.BlockSpec((k * k, cin), lambda b, co: (0, 0))
        in_specs = [x_spec, dw_spec, pw_spec]
        args = (xp, dw_flat, pw_bf16)
        scratch_shapes = (
            [pltpu.VMEM((nb * ho * wo, cin), jnp.bfloat16)] if use_scratch else [])

    out = pl.pallas_call(
        kernel,
        out_shape=jax.ShapeDtypeStruct((n, ho, wo, cout_p), jnp.float32),
        grid_spec=pltpu.PrefetchScalarGridSpec(
            num_scalar_prefetch=0,
            grid=grid,
            in_specs=in_specs,
            out_specs=out_spec,
            scratch_shapes=scratch_shapes,
        ),
        compiler_params=pltpu.CompilerParams(
            # The C_out axis MUST stay the innermost, "arbitrary" axis: the
            # depthwise VMEM scratch (when used) is written at co == 0 and
            # reused for co > 0 within the same batch block.
            dimension_semantics=("parallel", "arbitrary"),
            vmem_limit_bytes=vmem_limit,
        ),
    )(*args)

    return out[..., :cout] if cout_p != cout else out


# ------------------------- pure-JAX reference (check) ------------------------

def separable_conv2d_ref(x, dw_w, pw_w, *, k, p):
    """Matches kernel numerics: bf16-rounded input & MXU operands, f32 math."""
    xp = jnp.pad(x, ((0, 0), (p, p), (p, p), (0, 0))) if p else x
    xp = xp.astype(jnp.bfloat16).astype(jnp.float32)
    n, hp, wp, cin = xp.shape
    ho, wo = hp - k + 1, wp - k + 1
    if k == 1:
        pw_eff = dw_w.reshape(cin, 1) * pw_w
        b = pw_eff.astype(jnp.bfloat16).astype(jnp.float32)
        return jnp.einsum('nhwc,cd->nhwd', xp, b)
    acc = jnp.zeros((n, ho, wo, cin), jnp.float32)
    for dy in range(k):
        for dx in range(k):
            acc = acc + xp[:, dy:dy + ho, dx:dx + wo, :] * dw_w[dy, dx]
    a = acc.astype(jnp.bfloat16).astype(jnp.float32)
    b = pw_w.astype(jnp.bfloat16).astype(jnp.float32)
    return jnp.einsum('nhwc,cd->nhwd', a, b)


# ----------------------------------- main ------------------------------------

if __name__ == "__main__":
    def check(name, x, dw, pw, k, p, tol=2e-2):
        fn = jax.jit(functools.partial(separable_conv2d, k=k, p=p))
        out = jax.block_until_ready(fn(x, dw, pw))
        ref = separable_conv2d_ref(x, dw, pw, k=k, p=p)
        assert out.shape == ref.shape and out.dtype == jnp.float32, name
        err = float(jnp.max(jnp.abs(out - ref)))
        assert err < tol, f"{name}: max abs err {err}"

    # 1) Xception-style: SeparableConv2d(128, 256, k=3, s=1, p=1); Cout % 256
    #    == 0 -> single 256-wide C_out tile, fully fused (no VMEM scratch).
    kx, kd, kp = jax.random.split(jax.random.PRNGKey(0), 3)
    N, H, W, Cin, Cout, K, P = 2, 16, 16, 128, 256, 3, 1
    x_nchw = jax.random.normal(kx, (N, Cin, H, W), jnp.float32)   # PyTorch layout
    x_nhwc = jnp.transpose(x_nchw, (0, 2, 3, 1))                  # NCHW -> NHWC
    dw = jax.random.normal(kd, (K, K, Cin), jnp.float32) * 0.1
    pw = jax.random.normal(kp, (Cin, Cout), jnp.float32) * 0.05
    check("k3_p1_cout256", x_nhwc, dw, pw, K, P)

    # 2) Module defaults: SeparableConv2d(64, 96) i.e. k=1, s=1, p=0 ->
    #    depthwise folded into pointwise, C_out padded 96 -> 128 lanes.
    kx2, kd2, kp2 = jax.random.split(jax.random.PRNGKey(1), 3)
    x2 = jax.random.normal(kx2, (2, 16, 16, 64), jnp.float32)
    dw2 = jax.random.normal(kd2, (1, 1, 64), jnp.float32) * 0.1
    pw2 = jax.random.normal(kp2, (64, 96), jnp.float32) * 0.05
    check("k1_p0_cout96", x2, dw2, pw2, 1, 0)

    # 3) Multi-tile C_out (exercises the VMEM-scratch reuse across C_out tiles).
    kx3, kd3, kp3 = jax.random.split(jax.random.PRNGKey(2), 3)
    x3 = jax.random.normal(kx3, (2, 8, 8, 64), jnp.float32)
    dw3 = jax.random.normal(kd3, (3, 3, 64), jnp.float32) * 0.1
    pw3 = jax.random.normal(kp3, (64, 512), jnp.float32) * 0.05
    check("k3_p1_cout512", x3, dw3, pw3, 3, 1)

    print("KERNEL_OK")
</pallas_src>

<mosaic_0001>
module attributes {stable_mosaic.version = 11 : i64} {
  func.func @_sepconv_kernel(%arg0: i32, %arg1: i32, %arg2: memref<1x18x18x128xbf16, #tpu.memory_space<vmem>>, %arg3: memref<9x128xf32, #tpu.memory_space<vmem>>, %arg4: memref<128x256xbf16, #tpu.memory_space<vmem>>, %arg5: memref<1x16x16x256xf32, #tpu.memory_space<vmem>>) attributes {dimension_semantics = [#tpu.dimension_semantics<parallel>, #tpu.dimension_semantics<arbitrary>], iteration_bounds = array<i64: 2, 1>, scalar_prefetch = 0 : i64, scratch_operands = 0 : i64, tpu.core_type = #tpu.core_type<tc>, window_params = [{transform_indices = @transform_0, window_bounds = array<i64: 1, 18, 18, 128>}, {pipeline_mode = #tpu.pipeline_mode<synchronous>, transform_indices = @transform_1, window_bounds = array<i64: 9, 128>}, {transform_indices = @transform_2, window_bounds = array<i64: 128, 256>}, {transform_indices = @transform_3, window_bounds = array<i64: 1, 16, 16, 256>}]} {
    %c0 = arith.constant 0 : index
    %c0_0 = arith.constant 0 : index
    %c0_1 = arith.constant 0 : index
    %c0_2 = arith.constant 0 : index
    %0 = vector.load %arg2[%c0, %c0_0, %c0_1, %c0_2] : memref<1x18x18x128xbf16, #tpu.memory_space<vmem>>, vector<1x18x18x128xbf16>
    %1 = arith.extf %0 : vector<1x18x18x128xbf16> to vector<1x18x18x128xf32>
    %c0_3 = arith.constant 0 : index
    %c0_4 = arith.constant 0 : index
    %2 = vector.load %arg3[%c0_3, %c0_4] : memref<9x128xf32, #tpu.memory_space<vmem>>, vector<9x128xf32>
    %cst = arith.constant 0.000000e+00 : f32
    %3 = vector.broadcast %cst : f32 to vector<1x16x16x128xf32>
    %4 = vector.extract_strided_slice %1 {offsets = [0, 0, 0, 0], sizes = [1, 16, 16, 128], strides = [1, 1, 1, 1]} : vector<1x18x18x128xf32> to vector<1x16x16x128xf32>
    %5 = vector.extract_strided_slice %2 {offsets = [0, 0], sizes = [1, 128], strides = [1, 1]} : vector<9x128xf32> to vector<1x128xf32>
    %6 = vector.shape_cast %5 : vector<1x128xf32> to vector<128xf32>
    %7 = vector.shape_cast %6 : vector<128xf32> to vector<1x1x1x128xf32>
    %8 = vector.broadcast %7 : vector<1x1x1x128xf32> to vector<1x16x16x128xf32>
    %9 = arith.mulf %4, %8 : vector<1x16x16x128xf32>
    %10 = arith.addf %3, %9 : vector<1x16x16x128xf32>
    %11 = vector.extract_strided_slice %1 {offsets = [0, 0, 1, 0], sizes = [1, 16, 16, 128], strides = [1, 1, 1, 1]} : vector<1x18x18x128xf32> to vector<1x16x16x128xf32>
    %12 = vector.extract_strided_slice %2 {offsets = [1, 0], sizes = [1, 128], strides = [1, 1]} : vector<9x128xf32> to vector<1x128xf32>
    %13 = vector.shape_cast %12 : vector<1x128xf32> to vector<128xf32>
    %14 = vector.shape_cast %13 : vector<128xf32> to vector<1x1x1x128xf32>
    %15 = vector.broadcast %14 : vector<1x1x1x128xf32> to vector<1x16x16x128xf32>
    %16 = arith.mulf %11, %15 : vector<1x16x16x128xf32>
    %17 = arith.addf %10, %16 : vector<1x16x16x128xf32>
    %18 = vector.extract_strided_slice %1 {offsets = [0, 0, 2, 0], sizes = [1, 16, 16, 128], strides = [1, 1, 1, 1]} : vector<1x18x18x128xf32> to vector<1x16x16x128xf32>
    %19 = vector.extract_strided_slice %2 {offsets = [2, 0], sizes = [1, 128], strides = [1, 1]} : vector<9x128xf32> to vector<1x128xf32>
    %20 = vector.shape_cast %19 : vector<1x128xf32> to vector<128xf32>
    %21 = vector.shape_cast %20 : vector<128xf32> to vector<1x1x1x128xf32>
    %22 = vector.broadcast %21 : vector<1x1x1x128xf32> to vector<1x16x16x128xf32>
    %23 = arith.mulf %18, %22 : vector<1x16x16x128xf32>
    %24 = arith.addf %17, %23 : vector<1x16x16x128xf32>
    %25 = vector.extract_strided_slice %1 {offsets = [0, 1, 0, 0], sizes = [1, 16, 16, 128], strides = [1, 1, 1, 1]} : vector<1x18x18x128xf32> to vector<1x16x16x128xf32>
    %26 = vector.extract_strided_slice %2 {offsets = [3, 0], sizes = [1, 128], strides = [1, 1]} : vector<9x128xf32> to vector<1x128xf32>
    %27 = vector.shape_cast %26 : vector<1x128xf32> to vector<128xf32>
    %28 = vector.shape_cast %27 : vector<128xf32> to vector<1x1x1x128xf32>
    %29 = vector.broadcast %28 : vector<1x1x1x128xf32> to vector<1x16x16x128xf32>
    %30 = arith.mulf %25, %29 : vector<1x16x16x128xf32>
    %31 = arith.addf %24, %30 : vector<1x16x16x128xf32>
    %32 = vector.extract_strided_slice %1 {offsets = [0, 1, 1, 0], sizes = [1, 16, 16, 128], strides = [1, 1, 1, 1]} : vector<1x18x18x128xf32> to vector<1x16x16x128xf32>
    %33 = vector.extract_strided_slice %2 {offsets = [4, 0], sizes = [1, 128], strides = [1, 1]} : vector<9x128xf32> to vector<1x128xf32>
    %34 = vector.shape_cast %33 : vector<1x128xf32> to vector<128xf32>
    %35 = vector.shape_cast %34 : vector<128xf32> to vector<1x1x1x128xf32>
    %36 = vector.broadcast %35 : vector<1x1x1x128xf32> to vector<1x16x16x128xf32>
    %37 = arith.mulf %32, %36 : vector<1x16x16x128xf32>
    %38 = arith.addf %31, %37 : vector<1x16x16x128xf32>
    %39 = vector.extract_strided_slice %1 {offsets = [0, 1, 2, 0], sizes = [1, 16, 16, 128], strides = [1, 1, 1, 1]} : vector<1x18x18x128xf32> to vector<1x16x16x128xf32>
    %40 = vector.extract_strided_slice %2 {offsets = [5, 0], sizes = [1, 128], strides = [1, 1]} : vector<9x128xf32> to vector<1x128xf32>
    %41 = vector.shape_cast %40 : vector<1x128xf32> to vector<128xf32>
    %42 = vector.shape_cast %41 : vector<128xf32> to vector<1x1x1x128xf32>
    %43 = vector.broadcast %42 : vector<1x1x1x128xf32> to vector<1x16x16x128xf32>
    %44 = arith.mulf %39, %43 : vector<1x16x16x128xf32>
    %45 = arith.addf %38, %44 : vector<1x16x16x128xf32>
    %46 = vector.extract_strided_slice %1 {offsets = [0, 2, 0, 0], sizes = [1, 16, 16, 128], strides = [1, 1, 1, 1]} : vector<1x18x18x128xf32> to vector<1x16x16x128xf32>
    %47 = vector.extract_strided_slice %2 {offsets = [6, 0], sizes = [1, 128], strides = [1, 1]} : vector<9x128xf32> to vector<1x128xf32>
    %48 = vector.shape_cast %47 : vector<1x128xf32> to vector<128xf32>
    %49 = vector.shape_cast %48 : vector<128xf32> to vector<1x1x1x128xf32>
    %50 = vector.broadcast %49 : vector<1x1x1x128xf32> to vector<1x16x16x128xf32>
    %51 = arith.mulf %46, %50 : vector<1x16x16x128xf32>
    %52 = arith.addf %45, %51 : vector<1x16x16x128xf32>
    %53 = vector.extract_strided_slice %1 {offsets = [0, 2, 1, 0], sizes = [1, 16, 16, 128], strides = [1, 1, 1, 1]} : vector<1x18x18x128xf32> to vector<1x16x16x128xf32>
    %54 = vector.extract_strided_slice %2 {offsets = [7, 0], sizes = [1, 128], strides = [1, 1]} : vector<9x128xf32> to vector<1x128xf32>
    %55 = vector.shape_cast %54 : vector<1x128xf32> to vector<128xf32>
    %56 = vector.shape_cast %55 : vector<128xf32> to vector<1x1x1x128xf32>
    %57 = vector.broadcast %56 : vector<1x1x1x128xf32> to vector<1x16x16x128xf32>
    %58 = arith.mulf %53, %57 : vector<1x16x16x128xf32>
    %59 = arith.addf %52, %58 : vector<1x16x16x128xf32>
    %60 = vector.extract_strided_slice %1 {offsets = [0, 2, 2, 0], sizes = [1, 16, 16, 128], strides = [1, 1, 1, 1]} : vector<1x18x18x128xf32> to vector<1x16x16x128xf32>
    %61 = vector.extract_strided_slice %2 {offsets = [8, 0], sizes = [1, 128], strides = [1, 1]} : vector<9x128xf32> to vector<1x128xf32>
    %62 = vector.shape_cast %61 : vector<1x128xf32> to vector<128xf32>
    %63 = vector.shape_cast %62 : vector<128xf32> to vector<1x1x1x128xf32>
    %64 = vector.broadcast %63 : vector<1x1x1x128xf32> to vector<1x16x16x128xf32>
    %65 = arith.mulf %60, %64 : vector<1x16x16x128xf32>
    %66 = arith.addf %59, %65 : vector<1x16x16x128xf32>
    %67 = vector.shape_cast %66 : vector<1x16x16x128xf32> to vector<256x128xf32>
    %68 = arith.truncf %67 : vector<256x128xf32> to vector<256x128xbf16>
    %c0_5 = arith.constant 0 : index
    %c0_6 = arith.constant 0 : index
    %69 = vector.load %arg4[%c0_5, %c0_6] : memref<128x256xbf16, #tpu.memory_space<vmem>>, vector<128x256xbf16>
    %cst_7 = arith.constant dense<0.000000e+00> : vector<256x256xf32>
    %70 = tpu.matmul %68, %69, %cst_7 {dimension_numbers = #tpu.dot_dimension_numbers<[1], [0], [0], [1], [0, 0, 1, 1], [], []>} : vector<256x128xbf16>, vector<128x256xbf16>, vector<256x256xf32> -> vector<256x256xf32>
    %71 = vector.shape_cast %70 : vector<256x256xf32> to vector<1x16x16x256xf32>
    %c0_8 = arith.constant 0 : index
    %c0_9 = arith.constant 0 : index
    %c0_10 = arith.constant 0 : index
    %c0_11 = arith.constant 0 : index
    %72 = vector.load %arg5[%c0_8, %c0_9, %c0_10, %c0_11] : memref<1x16x16x256xf32, #tpu.memory_space<vmem>>, vector<1x16x16x256xf32>
    tpu.vector_store %arg5[%c0_8, %c0_9, %c0_10, %c0_11], %71 {strides = array<i32>} : memref<1x16x16x256xf32, #tpu.memory_space<vmem>>, vector<1x16x16x256xf32>,
    return
  }
  func.func @transform_0(%arg0: i32, %arg1: i32) -> (i32, i32, i32, i32) {
    %c0_i32 = arith.constant 0 : i32
    %c0_i32_0 = arith.constant 0 : i32
    %c0_i32_1 = arith.constant 0 : i32
    %c0_i32_2 = arith.constant 0 : i32
    return %arg0, %c0_i32, %c0_i32_0, %c0_i32_1 : i32, i32, i32, i32
  }
  func.func @transform_1(%arg0: i32, %arg1: i32) -> (i32, i32) {
    %c0_i32 = arith.constant 0 : i32
    %c0_i32_0 = arith.constant 0 : i32
    %c0_i32_1 = arith.constant 0 : i32
    return %c0_i32, %c0_i32_0 : i32, i32
  }
  func.func @transform_2(%arg0: i32, %arg1: i32) -> (i32, i32) {
    %c0_i32 = arith.constant 0 : i32
    %c0_i32_0 = arith.constant 0 : i32
    return %c0_i32, %arg1 : i32, i32
  }
  func.func @transform_3(%arg0: i32, %arg1: i32) -> (i32, i32, i32, i32) {
    %c0_i32 = arith.constant 0 : i32
    %c0_i32_0 = arith.constant 0 : i32
    %c0_i32_1 = arith.constant 0 : i32
    return %arg0, %c0_i32, %c0_i32_0, %arg1 : i32, i32, i32, i32
  }
}

</mosaic_0001>

<bundles_post_ra>
// kernel: separable_conv2d.1
= control target key start
LH: loop header
LB: loop body
LE: loop exit
PB: predicated region body
PF: predicated region fallthrough
CT: control target
= control target key end

     0   :  { %8 = vsyncpa [#allocation3], 0  ;;  %s4143_s0 = inlined_call_operand.vmem [shape: bf16[2,18,18,128], index: 0, kind: input, shape index: {}]   ;;  %s4144_s1 = inlined_call_operand.vmem [shape: f32[9,128], index: 1, kind: input, shape index: {}]   ;;  %s4145_s2 = inlined_call_operand.vmem [shape: bf16[128,256], index: 2, kind: input, shape index: {}]   ;;  %s4146_s3 = inlined_call_operand.hbm [shape: f32[2,16,16,256], index: 3, kind: output, shape index: {}]  }
   0x1   :  { %10 = vsyncpa [#allocation3 + $0x1], 0  ;;  %s2740_s12 = smov 0   ;;  %s2742_s13 = smov 0  }
   0x2   :  { %s2744_s14 = smov 0   ;;  %s2746_s15 = smov 0  }
   0x3   :  { %s2748_s16 = smov 0   ;;  %s2750_s17 = smov 0  }
   0x4 LB: > { %s2460_s18 = sadd.s32 4294967295, %s2714_s17   ;;  %s2461_s19 = sadd.s32 4294967294, %s2714_s17   ;;  %s2714_s17 = sphi %s2750_s17, %s16_s17   ;;  %s2710_s16 = sphi %s2748_s16, %s4153_s16   ;;  %s2706_s15 = sphi %s2746_s15, %s4152_s15   ;;  %s2702_s14 = sphi %s2744_s14, %s4151_s14   ;;  %s2698_s13 = sphi %s2742_s13, %s4150_s13   ;;  %s2694_s12 = sphi %s2740_s12, %s4149_s12  }
   0x5   : > { %s28_s20 = sadd.s32 1, %s2710_s16  ;;  %s110_s21 = sadd.s32 1, %s2702_s14 }
   0x6   : > { %p30_p0 = scmp.ge.s32.totalorder %s28_s20, 2  ;;  %p120_p1 = scmp.ne.s32.totalorder %s2702_s14, %s2698_s13 }
   0x7   : > { %p121_p2 = scmp.eq.s32.totalorder %s2460_s18, 1  ;;  %p126_p3 = scmp.ne.s32.totalorder %s2698_s13, %s2694_s12 }
   0x8   : > { %s4155_s20 = smov (%p30_p0, %s28_s20), 0  ;;  %p127_p5 = scmp.eq.s32.totalorder %s2461_s19, 1 }
   0x9   : > { %p2780_p4 = por %p121_p2, %p120_p1  ;;  %s105_s23 = ssub.s32 %s2710_s16, %s4155_s20 }
   0xa   : > { %p2465_p6 = scmp.ge.s32.totalorder %s2714_s17, 1  ;;  %p108_p7 = scmp.eq.s32.totalorder %s105_s23, 0 }
   0xb   : > { %p2787_p8 = por %p127_p5, %p126_p3  ;;  %p165_p9 = scmp.lt.s32.totalorder %s2714_s17, 3 }
   0xc   : > { %s2793_s25 = scalar_select %p108_p7, %s2702_s14, %s110_s21  }
   0xd   : > { %p166_p10 = pnand %p2465_p6, %p165_p9 }
   0xe   : > { %v2610_v0 = vld [vmem:[%s4145_s2 + $0x4] ss:$8 sps:$4 sm:$0xff] (!%p166_p10)   ;;  %p194_p11 = scmp.lt.s32.totalorder (!%p166_p10), %s2706_s15, 1  ;;  %v2612_v1 = vld [vmem:[%s4145_s2] ss:$8 sps:$4 sm:$0xff] (!%p166_p10)   ;;  %v2716_v2 = vmov (!%p166_p10), 0   ;;  %v317_v3 = vlaneseq (!%p166_p10) }
   0xf   : > { %169 = sbr.rel (%p166_p10) target bundleno = 561 (0x231), region = 32  ;;  %2131 = vmatprep.mubr.bf16.mxu0 (!%p166_p10), %v2716_v2  ;;  %2211 = vmatprep.mubr.bf16.mxu1 (!%p166_p10), %v2716_v2  ;;  %v2613_v4 = vld [vmem:[%s4145_s2 + $0x14] ss:$8 sps:$4 sm:$0xff] (!%p166_p10)   ;;  %v2615_v5 = vld [vmem:[%s4145_s2 + $0x10] ss:$8 sps:$4 sm:$0xff] (!%p166_p10)   ;;  %vm485_vm0 = vcmask (!%p166_p10), 1046528  }
  0x10   : > { %2099 = vmatprep.subr.bf16.mxu0 (!%p166_p10), %v2610_v0  ;;  %2535 = vmatprep.subr.bf16.mxu1 (!%p166_p10), %v2610_v0  ;;  %v2616_v6 = vld [vmem:[%s4145_s2 + $0x24] ss:$8 sps:$4 sm:$0xff] (!%p166_p10)   ;;  %v2814_v7 = vshrl.u32 (!%p166_p10), %v317_v3, 7  ;;  %v2618_v8 = vld [vmem:[%s4145_s2 + $0x20] ss:$8 sps:$4 sm:$0xff] (!%p166_p10)   ;;  %vm730_vm1 = vcmask (!%p166_p10), 1045504  }
  0x11   : > { %2100 = vmatpush1.bf16.msra.mxu0 (!%p166_p10), %v2612_v1  ;;  %2543 = vmatpush1.bf16.msra.mxu1 (!%p166_p10), %v2612_v1  ;;  %v2619_v9 = vld [vmem:[%s4145_s2 + $0x34] ss:$8 sps:$4 sm:$0xff] (!%p166_p10)   ;;  %v2621_v10 = vld [vmem:[%s4145_s2 + $0x30] ss:$8 sps:$4 sm:$0xff] (!%p166_p10)   ;;  %v2622_v14 = vld [vmem:[%s4145_s2 + $0x44] ss:$8 sps:$4 sm:$0xff] (!%p166_p10)  }
  0x12   : > { %2101 = vmatprep.subr.bf16.mxu0 (!%p166_p10), %v2613_v4  ;;  %2536 = vmatprep.subr.bf16.mxu1 (!%p166_p10), %v2613_v4  ;;  %v319_v11 = vsub.s32 (!%p166_p10), 0, %v2814_v7  ;;  %v387_v12 = vsub.s32 (!%p166_p10), 1, %v2814_v7  ;;  %v632_v13 = vsub.s32 (!%p166_p10), 2, %v2814_v7  ;;  %v877_v16 = vsub.s32 (!%p166_p10), 3, %v2814_v7  ;;  %v2856_v32 = vld [vmem:[%s4144_s1] sm:$0xff] (!%p166_p10)  ;;  %s191_s9 = sand.u32 (!%p166_p10), 1, %s2698_s13  }
  0x13   : > { %v945_v17 = vsub.s32 (!%p166_p10), 4, %v2814_v7  ;;  %v1189_v18 = vsub.s32 (!%p166_p10), 5, %v2814_v7  ;;  %v1433_v19 = vsub.s32 (!%p166_p10), 6, %v2814_v7  ;;  %v1501_v25 = vsub.s32 (!%p166_p10), 7, %v2814_v7  ;;  %v2624_v42 = vld [vmem:[%s4145_s2 + $0x40] ss:$8 sps:$4 sm:$0xff] (!%p166_p10)  }
  0x14   : > { %v2865_v36 = vrot.slane (!%p166_p10), %v2856_v32, %v319_v11  ;;  %v2869_v38 = vrot.slane (!%p166_p10), %v2856_v32, %v387_v12  ;;  %v2872_v39 = vrot.slane (!%p166_p10), %v2856_v32, %v632_v13  ;;  %v2875_v40 = vrot.slane (!%p166_p10), %v2856_v32, %v877_v16  ;;  %v2625_v47 = vld [vmem:[%s4145_s2 + $0x54] ss:$8 sps:$4 sm:$0xff] (!%p166_p10)   ;;  %v2627_v61 = vld [vmem:[%s4145_s2 + $0x50] ss:$8 sps:$4 sm:$0xff] (!%p166_p10)   ;;  %v2628_v3 = vld [vmem:[%s4145_s2 + $0x64] ss:$8 sps:$4 sm:$0xff] (!%p166_p10)  }
  0x15   : > { %2102 = vmatpush1.bf16.msra.mxu0 (!%p166_p10), %v2615_v5  ;;  %2544 = vmatpush1.bf16.msra.mxu1 (!%p166_p10), %v2615_v5  ;;  %v2878_v41 = vrot.slane (!%p166_p10), %v2856_v32, %v945_v17  ;;  %v2886_v45 = vrot.slane (!%p166_p10), %v2856_v32, %v1189_v18  ;;  %v2630_v17 = vld [vmem:[%s4145_s2 + $0x60] ss:$8 sps:$4 sm:$0xff] (!%p166_p10)   ;;  %s2717_s30 = smov (!%p166_p10), [#allocation2]  }
  0x16   : > { %s195_s5 = scalar_select %p194_p11, %s2706_s15, 1  ;;  %2103 = vmatprep.subr.bf16.mxu0 %v2616_v6  ;;  %2537 = vmatprep.subr.bf16.mxu1 %v2616_v6  ;;  %v2932_v18 = vld [vmem:[%s4144_s1 + $0x8] ss:$0 sm:$0xff] }
  0x17   : > { %s2640_s4 = sshll.u32 %s2717_s30, 4  ;;  %s2641_s4 = int_to_ptr.vmem [resolvable:$false] %s2640_s4 }
  0x18   : > { %s2551_s10 = smul.u32 216, %s195_s5  ;;  %s2642_s5 = scalar_lea.vmem %s2641_s4, 16384 }
  0x19   : > { %2104 = vmatpush1.bf16.msra.mxu0 %v2618_v8  ;;  %2545 = vmatpush1.bf16.msra.mxu1 %v2618_v8 }
  0x1a   : > { %s2822_s23 = scalar_lea.vmem %s4143_s0, %s2551_s10  ;;  %2105 = vmatprep.subr.bf16.mxu0 %v2619_v9  ;;  %2538 = vmatprep.subr.bf16.mxu1 %v2619_v9  ;;  %s2466_s10 = sshll.u32 %s191_s9, 9 }
  0x1b   : > { %v2492_v15 = vld [vmem:[%s2822_s23] sm:$0xff]   ;;  %v209_v22 = vld [vmem:[%s2822_s23 + $0x8] sm:$0x1]  ;;  %v210_v23 = vld [vmem:[%s2822_s23 + $0xc] sm:$0xff]   ;;  %s3815_s11 = scalar_lea.vmem [#allocation2], %s2466_s10 }
  0x1c   : > { %v2493_v20 = vunpack.c.l.bf16 %v2492_v15  ;;  %v2494_v21 = vunpack.c.h.bf16 %v2492_v15  ;;  %v212_v24 = vld [vmem:[%s2822_s23 + $0x14] sm:$0x1]  ;;  %v2527_v26 = vld [vmem:[%s2822_s23 + $0x18] sm:$0xff]   ;;  %v215_v27 = vld [vmem:[%s2822_s23 + $0x20] sm:$0x1]  ;;  %v263_v28 = vunpack.c.l.bf16 %v209_v22  ;;  %v2847_v29 = vunpack.c.l.bf16 %v210_v23  ;;  %s2372_s21 = sshll.u32 %s3815_s11, 4  ;;  %s4090_s21 = int_to_ptr.vmem [resolvable:$true] %s2372_s21 }
  0x1d   : > { %v2849_v30 = vunpack.c.h.bf16 %v210_v23  ;;  %v2851_v31 = vunpack.c.l.bf16 %v212_v24  ;;  %v2858_v33 = vunpack.c.l.bf16 %v2527_v26  ;;  %v2860_v34 = vunpack.c.h.bf16 %v2527_v26  ;;  %v2530_v37 = vld [vmem:[%s2822_s23 + $0x60] sm:$0xff]   ;;  %2106 = vmatpush1.bf16.msra.mxu0 %v2621_v10  ;;  %2546 = vmatpush1.bf16.msra.mxu1 %v2621_v10  ;;  %v2531_v56 = vld [vmem:[%s2822_s23 + $0x78] sm:$0xff]   ;;  %s2636_s29 = scalar_lea.vmem %s4090_s21, 8192  ;;  %p2643_p1 = scmp.lt.s32.totalorder %s4090_s21, %s2641_s4 }
  0x1e   : > { %v2862_v35 = vunpack.c.l.bf16 %v215_v27  ;;  %v321_v43 = vmul.f32 %v2493_v20, %v2865_v36  ;;  %v322_v44 = vmul.f32 %v2494_v21, %v2865_v36  ;;  %v2888_v46 = vunpack.c.l.bf16 %v2530_v37  ;;  %2107 = vmatprep.subr.bf16.mxu0 %v2622_v14  ;;  %2539 = vmatprep.subr.bf16.mxu1 %v2622_v14  ;;  %v2631_v24 = vld [vmem:[%s4145_s2 + $0x74] ss:$8 sps:$4 sm:$0xff]   ;;  %p2637_p12 = scmp.ne.s32.totalorder %s4090_s21, %s2636_s29  ;;  %p2644_p2 = scmp.lt.s32.totalorder %s2642_s5, %s2636_s29 }
  0x1f   : > { %v389_v48 = vmul.f32 %v2493_v20, %v2869_v38  ;;  %v390_v49 = vmul.f32 %v2494_v21, %v2869_v38  ;;  %v391_v50 = vmul.f32 %v2869_v38, %v263_v28  ;;  %v2896_v51 = vunpack.c.h.bf16 %v2530_v37 }
  0x20   : > { %v634_v52 = vmul.f32 %v2493_v20, %v2872_v39  ;;  %v635_v53 = vmul.f32 %v2494_v21, %v2872_v39  ;;  %v636_v54 = vmul.f32 %v2872_v39, %v263_v28  ;;  %v879_v55 = vmul.f32 %v2875_v40, %v2847_v29  ;;  %p2638_p13 = pnand %p2637_p12, %p2780_p4  ;;  %p2645_p3 = por %p2644_p2, %p2643_p1 }
  0x21   : > { %v486_v57 = vrot.slane %v389_v48, 1  ;;  %v487_v58 = vrot.slane %v390_v49, 1  ;;  %v489_v59 = vrot.slane %v391_v50, 1  ;;  %v880_v60 = vmul.f32 %v2875_v40, %v2849_v30  ;;  %2108 = vmatpush1.bf16.msra.mxu0 %v2624_v42  ;;  %2547 = vmatpush1.bf16.msra.mxu1 %v2624_v42  ;;  %v233_v42 = vld [vmem:[%s2822_s23 + $0x68] sm:$0x1] }
  0x22   : > { %v731_v62 = vrot.slane %v634_v52, 2  ;;  %v732_v63 = vrot.slane %v635_v53, 2  ;;  %v734_v0 = vrot.slane %v636_v54, 2  ;;  %v947_v1 = vmul.f32 %v2878_v41, %v2847_v29  ;;  %2109 = vmatprep.subr.bf16.mxu0 %v2625_v47  ;;  %2540 = vmatprep.subr.bf16.mxu1 %v2625_v47  ;;  %v2633_v54 = vld [vmem:[%s4145_s2 + $0x70] ss:$8 sps:$4 sm:$0xff]   ;;  %p2639_p0 = pneg %p2638_p13 }
  0x23   : > { %v488_v4 = vsel %vm485_vm0, %v486_v57, %v487_v58  ;;  %v490_v5 = vsel %vm485_vm0, %v487_v58, %v489_v59  ;;  %v948_v6 = vmul.f32 %v2878_v41, %v2849_v30  ;;  %v2918_v8 = vunpack.c.l.bf16 %v2531_v56  ;;  %v234_v57 = vld [vmem:[%s2822_s23 + $0x6c] sm:$0xff]  }
  0x24   : > { %v598_v9 = vadd.f32 %v488_v4, %v321_v43  ;;  %v599_v10 = vadd.f32 %v490_v5, %v322_v44  ;;  %v733_v11 = vsel %vm730_vm1, %v731_v62, %v732_v63  ;;  %v735_v12 = vsel %vm730_vm1, %v732_v63, %v734_v0  ;;  %v236_v4 = vld [vmem:[%s2822_s23 + $0x74] sm:$0x1]  ;;  %v239_v5 = vld [vmem:[%s2822_s23 + $0x80] sm:$0x1]  ;;  %p2646_p5 = pnand %p2645_p3, %p2639_p0 }
  0x25   : > { %v949_v13 = vmul.f32 %v2878_v41, %v2851_v31  ;;  %v1043_v14 = vrot.slane %v947_v1, 1  ;;  %v1044_v15 = vrot.slane %v948_v6, 1  ;;  %v1191_v16 = vmul.f32 %v2886_v45, %v2847_v29  ;;  %2110 = vmatpush1.bf16.msra.mxu0 %v2627_v61  ;;  %2548 = vmatpush1.bf16.msra.mxu1 %v2627_v61 }
  0x26   : > { %v843_v20 = vadd.f32 %v733_v11, %v598_v9  ;;  %v844_v21 = vadd.f32 %v735_v12, %v599_v10  ;;  %v1192_v22 = vmul.f32 %v2886_v45, %v2849_v30  ;;  %v2936_v23 = vunpack.c.h.bf16 %v2531_v56  ;;  %2111 = vmatprep.subr.bf16.mxu0 %v2628_v3  ;;  %2541 = vmatprep.subr.bf16.mxu1 %v2628_v3 }
  0x27   : > { %v1045_v26 = vsel %vm485_vm0, %v1043_v14, %v1044_v15  ;;  %v1046_v27 = vrot.slane %v949_v13, 1  ;;  %v1193_v28 = vmul.f32 %v2886_v45, %v2851_v31  ;;  %v1287_v37 = vrot.slane %v1191_v16, 2 }
  0x28   : > { %v911_v43 = vadd.f32 %v879_v55, %v843_v20  ;;  %v912_v44 = vadd.f32 %v880_v60, %v844_v21  ;;  %v1288_v47 = vrot.slane %v1192_v22, 2  ;;  %v2948_v48 = vrot.slane %v2856_v32, %v1433_v19 }
  0x29   : > { %v1047_v49 = vsel %vm485_vm0, %v1044_v15, %v1046_v27  ;;  %v1290_v50 = vrot.slane %v1193_v28, 2  ;;  %v2954_v52 = vrot.slane %v2856_v32, %v1501_v25  ;;  %v1747_v53 = vmul.f32 %v2858_v33, %v2932_v18  ;;  %2112 = vmatpush1.bf16.msra.mxu0 %v2630_v17  ;;  %2549 = vmatpush1.bf16.msra.mxu1 %v2630_v17 }
  0x2a   : > { %v1155_v55 = vadd.f32 %v1045_v26, %v911_v43  ;;  %v1156_v19 = vadd.f32 %v1047_v49, %v912_v44  ;;  %v1289_v56 = vsel %vm730_vm1, %v1287_v37, %v1288_v47  ;;  %v2963_v7 = vunpack.c.l.bf16 %v233_v42  ;;  %2113 = vmatprep.subr.bf16.mxu0 %v2631_v24  ;;  %2542 = vmatprep.subr.bf16.mxu1 %v2631_v24 }
  0x2b   : > { %v1291_v25 = vsel %vm730_vm1, %v1288_v47, %v1290_v50  ;;  %v1435_v32 = vmul.f32 %v2858_v33, %v2948_v48  ;;  %v1436_v58 = vmul.f32 %v2860_v34, %v2948_v48  ;;  %v1843_v59 = vrot.slane %v1747_v53, 2 }
  0x2c   : > { %v1399_v60 = vadd.f32 %v1289_v56, %v1155_v55  ;;  %v1400_v61 = vadd.f32 %v1291_v25, %v1156_v19  ;;  %v1503_v62 = vmul.f32 %v2858_v33, %v2954_v52  ;;  %v1504_v63 = vmul.f32 %v2860_v34, %v2954_v52 }
  0x2d   : > { %v1505_v0 = vmul.f32 %v2954_v52, %v2862_v35  ;;  %v1748_v1 = vmul.f32 %v2860_v34, %v2932_v18  ;;  %v1749_v3 = vmul.f32 %v2932_v18, %v2862_v35  ;;  %v2982_v6 = vunpack.c.l.bf16 %v234_v57  ;;  %2114 = vmatpush1.bf16.msra.mxu0 %v2633_v54  ;;  %2550 = vmatpush1.bf16.msra.mxu1 %v2633_v54 }
  0x2e   : > { %v1467_v9 = vadd.f32 %v1435_v32, %v1399_v60  ;;  %v1468_v10 = vadd.f32 %v1436_v58, %v1400_v61  ;;  %v1599_v11 = vrot.slane %v1503_v62, 1  ;;  %v1600_v12 = vrot.slane %v1504_v63, 1 }
  0x2f   : > { %v1602_v13 = vrot.slane %v1505_v0, 1  ;;  %v1844_v14 = vrot.slane %v1748_v1, 2  ;;  %v1846_v15 = vrot.slane %v1749_v3, 2  ;;  %v2984_v16 = vunpack.c.h.bf16 %v234_v57 }
  0x30   : > { %v1601_v17 = vsel %vm485_vm0, %v1599_v11, %v1600_v12  ;;  %v2987_v20 = vunpack.c.l.bf16 %v236_v4  ;;  %v2989_v21 = vunpack.c.l.bf16 %v239_v5  ;;  %v337_v22 = vmul.f32 %v2888_v46, %v2865_v36 }
  0x31   : > { %v1603_v24 = vsel %vm485_vm0, %v1600_v12, %v1602_v13  ;;  %v1711_v26 = vadd.f32 %v1601_v17, %v1467_v9  ;;  %v1845_v27 = vsel %vm730_vm1, %v1843_v59, %v1844_v14  ;;  %v1847_v28 = vsel %vm730_vm1, %v1844_v14, %v1846_v15 }
  0x32   : > { %v1712_v37 = vadd.f32 %v1603_v24, %v1468_v10  ;;  %v338_v42 = vmul.f32 %v2896_v51, %v2865_v36  ;;  %v413_v43 = vmul.f32 %v2888_v46, %v2869_v38  ;;  %v414_v44 = vmul.f32 %v2896_v51, %v2869_v38 }
  0x33   : > { %v1955_v47 = vadd.f32 %v1845_v27, %v1711_v26  ;;  %v415_v49 = vmul.f32 %v2869_v38, %v2963_v7  ;;  %v658_v50 = vmul.f32 %v2888_v46, %v2872_v39  ;;  %v659_v53 = vmul.f32 %v2896_v51, %v2872_v39 }
  0x34   : > { %v1956_v54 = vadd.f32 %v1847_v28, %v1712_v37  ;;  %v526_v55 = vrot.slane %v413_v43, 1  ;;  %v527_v19 = vrot.slane %v414_v44, 1  ;;  %v660_v56 = vmul.f32 %v2872_v39, %v2963_v7 }
  0x35   : > { %v529_v57 = vrot.slane %v415_v49, 1  ;;  %v771_v25 = vrot.slane %v658_v50, 2  ;;  %v772_v32 = vrot.slane %v659_v53, 2  ;;  %v895_v58 = vmul.f32 %v2875_v40, %v2982_v6 }
  0x36   : > { %v1987_v59 = vpack.c.bf16 %v1956_v54, %v1955_v47  ;;  %v528_v60 = vsel %vm485_vm0, %v526_v55, %v527_v19  ;;  %v774_v61 = vrot.slane %v660_v56, 2  ;;  %v896_v62 = vmul.f32 %v2875_v40, %v2984_v16 }
  0x37   : > { %v530_v63 = vsel %vm485_vm0, %v527_v19, %v529_v57  ;;  %v614_v0 = vadd.f32 %v528_v60, %v337_v22  ;;  %v773_v1 = vsel %vm730_vm1, %v771_v25, %v772_v32  ;;  %v971_v3 = vmul.f32 %v2878_v41, %v2982_v6  ;;  %v216_v25 = vld [vmem:[%s2822_s23 + $0x24] sm:$0xff]  }
  0x38   : > { %2132 = vmatmul.mubr.bf16.vlgmr.msra.gmra.mrb[0].mxu0 %v1987_v59  ;;  %v615_v4 = vadd.f32 %v530_v63, %v338_v42  ;;  %v775_v5 = vsel %vm730_vm1, %v772_v32, %v774_v61  ;;  %v972_v9 = vmul.f32 %v2878_v41, %v2984_v16  ;;  %v973_v10 = vmul.f32 %v2878_v41, %v2987_v20 }
  0x39   : > { %v859_v11 = vadd.f32 %v773_v1, %v614_v0  ;;  %v1083_v12 = vrot.slane %v971_v3, 1  ;;  %v1215_v13 = vmul.f32 %v2886_v45, %v2982_v6  ;;  %v1216_v14 = vmul.f32 %v2886_v45, %v2984_v16  ;;  %2141 = vmatprep.mubr.bf16.mxu0 %v2716_v2  ;;  %v218_v1 = vld [vmem:[%s2822_s23 + $0x2c] sm:$0x1] }
  0x3a   : > { %v860_v15 = vadd.f32 %v775_v5, %v615_v4  ;;  %v1084_v17 = vrot.slane %v972_v9, 1  ;;  %v1086_v22 = vrot.slane %v973_v10, 1  ;;  %v1217_v24 = vmul.f32 %v2886_v45, %v2987_v20 }
  0x3b   : > { %v927_v26 = vadd.f32 %v895_v58, %v859_v11  ;;  %v1327_v27 = vrot.slane %v1215_v13, 2  ;;  %v1328_v28 = vrot.slane %v1216_v14, 2  ;;  %v1451_v37 = vmul.f32 %v2918_v8, %v2948_v48 }
  0x3c   : > { %v928_v42 = vadd.f32 %v896_v62, %v860_v15  ;;  %v1085_v43 = vsel %vm485_vm0, %v1083_v12, %v1084_v17  ;;  %v1087_v44 = vsel %vm485_vm0, %v1084_v17, %v1086_v22  ;;  %v1330_v47 = vrot.slane %v1217_v24, 2 }
  0x3d   : > { %v1171_v49 = vadd.f32 %v1085_v43, %v927_v26  ;;  %v1329_v50 = vsel %vm730_vm1, %v1327_v27, %v1328_v28  ;;  %v1452_v53 = vmul.f32 %v2936_v23, %v2948_v48  ;;  %v1527_v54 = vmul.f32 %v2918_v8, %v2954_v52 }
  0x3e   : > { %v1172_v55 = vadd.f32 %v1087_v44, %v928_v42  ;;  %v1331_v19 = vsel %vm730_vm1, %v1328_v28, %v1330_v47  ;;  %v1528_v56 = vmul.f32 %v2936_v23, %v2954_v52  ;;  %v1529_v57 = vmul.f32 %v2954_v52, %v2989_v21 }
  0x3f   : > { %v1415_v32 = vadd.f32 %v1329_v50, %v1171_v49  ;;  %v1639_v58 = vrot.slane %v1527_v54, 1  ;;  %v1771_v59 = vmul.f32 %v2918_v8, %v2932_v18  ;;  %v1772_v60 = vmul.f32 %v2936_v23, %v2932_v18 }
  0x40   : > { %v1416_v61 = vadd.f32 %v1331_v19, %v1172_v55  ;;  %v1640_v62 = vrot.slane %v1528_v56, 1  ;;  %v1642_v63 = vrot.slane %v1529_v57, 1  ;;  %v1773_v0 = vmul.f32 %v2932_v18, %v2989_v21 }
  0x41   : > { %v1483_v3 = vadd.f32 %v1451_v37, %v1415_v32  ;;  %v1883_v4 = vrot.slane %v1771_v59, 2  ;;  %v1884_v5 = vrot.slane %v1772_v60, 2  ;;  %v3053_v9 = vunpack.c.l.bf16 %v216_v25 }
  0x42   : > { %v1484_v10 = vadd.f32 %v1452_v53, %v1416_v61  ;;  %v1641_v11 = vsel %vm485_vm0, %v1639_v58, %v1640_v62  ;;  %v1643_v12 = vsel %vm485_vm0, %v1640_v62, %v1642_v63  ;;  %v1886_v13 = vrot.slane %v1773_v0, 2 }
  0x43   : > { %v1727_v14 = vadd.f32 %v1641_v11, %v1483_v3  ;;  %v1885_v15 = vsel %vm730_vm1, %v1883_v4, %v1884_v5  ;;  %v3058_v17 = vunpack.c.h.bf16 %v216_v25  ;;  %v3060_v22 = vunpack.c.l.bf16 %v218_v1 }
  0x44   : > { %v1728_v24 = vadd.f32 %v1643_v12, %v1484_v10  ;;  %v1887_v26 = vsel %vm730_vm1, %v1884_v5, %v1886_v13  ;;  %v323_v27 = vmul.f32 %v2865_v36, %v2847_v29  ;;  %v324_v28 = vmul.f32 %v2865_v36, %v2849_v30 }
  0x45   : > { %v1971_v37 = vadd.f32 %v1885_v15, %v1727_v14  ;;  %v392_v42 = vmul.f32 %v2869_v38, %v2847_v29  ;;  %v393_v43 = vmul.f32 %v2869_v38, %v2849_v30  ;;  %v394_v44 = vmul.f32 %v2869_v38, %v2851_v31 }
  0x46   : > { %v1972_v47 = vadd.f32 %v1887_v26, %v1728_v24  ;;  %v637_v49 = vmul.f32 %v2872_v39, %v2847_v29  ;;  %v638_v50 = vmul.f32 %v2872_v39, %v2849_v30  ;;  %v639_v53 = vmul.f32 %v2872_v39, %v2851_v31 }
  0x47   : > { %v491_v54 = vrot.slane %v392_v42, 1  ;;  %v492_v55 = vrot.slane %v393_v43, 1  ;;  %v494_v19 = vrot.slane %v394_v44, 1  ;;  %v881_v56 = vmul.f32 %v2858_v33, %v2875_v40 }
  0x48   : > { %v1995_v57 = vpack.c.bf16 %v1972_v47, %v1971_v37  ;;  %v736_v25 = vrot.slane %v637_v49, 2  ;;  %v737_v32 = vrot.slane %v638_v50, 2  ;;  %v739_v58 = vrot.slane %v639_v53, 2 }
  0x49   : > { %v493_v59 = vsel %vm485_vm0, %v491_v54, %v492_v55  ;;  %v495_v29 = vsel %vm485_vm0, %v492_v55, %v494_v19  ;;  %v882_v30 = vmul.f32 %v2860_v34, %v2875_v40  ;;  %v950_v31 = vmul.f32 %v2858_v33, %v2878_v41  ;;  %v240_v55 = vld [vmem:[%s2822_s23 + $0x84] sm:$0xff]  }
  0x4a   : > { %2212 = vmatmul.mubr.bf16.vlgmr.msra.gmra.mrb[0].mxu1 %v1995_v57  ;;  %v600_v60 = vadd.f32 %v493_v59, %v323_v27  ;;  %v601_v61 = vadd.f32 %v495_v29, %v324_v28  ;;  %v738_v62 = vsel %vm730_vm1, %v736_v25, %v737_v32  ;;  %v740_v63 = vsel %vm730_vm1, %v737_v32, %v739_v58 }
  0x4b   : > { %2221 = vmatprep.mubr.bf16.mxu1 %v2716_v2  ;;  %v951_v0 = vmul.f32 %v2860_v34, %v2878_v41  ;;  %v952_v1 = vmul.f32 %v2878_v41, %v2862_v35  ;;  %v1048_v3 = vrot.slane %v950_v31, 1  ;;  %v1194_v4 = vmul.f32 %v2858_v33, %v2886_v45 }
  0x4c   : > { %v845_v5 = vadd.f32 %v738_v62, %v600_v60  ;;  %v846_v10 = vadd.f32 %v740_v63, %v601_v61  ;;  %v1195_v11 = vmul.f32 %v2860_v34, %v2886_v45  ;;  %v1196_v12 = vmul.f32 %v2886_v45, %v2862_v35 }
  0x4d   : > { %v1049_v13 = vrot.slane %v951_v0, 1  ;;  %v1051_v14 = vrot.slane %v952_v1, 1  ;;  %v1292_v15 = vrot.slane %v1194_v4, 2  ;;  %v1437_v24 = vmul.f32 %v2948_v48, %v3053_v9 }
  0x4e   : > { %v913_v26 = vadd.f32 %v881_v56, %v845_v5  ;;  %v914_v27 = vadd.f32 %v882_v30, %v846_v10  ;;  %v1293_v28 = vrot.slane %v1195_v11, 2  ;;  %v1295_v37 = vrot.slane %v1196_v12, 2  ;;  %v242_v30 = vld [vmem:[%s2822_s23 + $0x8c] sm:$0x1] }
  0x4f   : > { %v1050_v42 = vsel %vm485_vm0, %v1048_v3, %v1049_v13  ;;  %v1052_v43 = vsel %vm485_vm0, %v1049_v13, %v1051_v14  ;;  %v1438_v44 = vmul.f32 %v2948_v48, %v3058_v17  ;;  %v1506_v47 = vmul.f32 %v2954_v52, %v3053_v9 }
  0x50   : > { %v1157_v49 = vadd.f32 %v1050_v42, %v913_v26  ;;  %v1158_v50 = vadd.f32 %v1052_v43, %v914_v27  ;;  %v1294_v53 = vsel %vm730_vm1, %v1292_v15, %v1293_v28  ;;  %v1296_v54 = vsel %vm730_vm1, %v1293_v28, %v1295_v37 }
  0x51   : > { %v1507_v19 = vmul.f32 %v2954_v52, %v3058_v17  ;;  %v1508_v56 = vmul.f32 %v2954_v52, %v3060_v22  ;;  %v1604_v57 = vrot.slane %v1506_v47, 1  ;;  %v1750_v25 = vmul.f32 %v2932_v18, %v3053_v9 }
  0x52   : > { %v1401_v32 = vadd.f32 %v1294_v53, %v1157_v49  ;;  %v1402_v58 = vadd.f32 %v1296_v54, %v1158_v50  ;;  %v1751_v59 = vmul.f32 %v2932_v18, %v3058_v17  ;;  %v1752_v29 = vmul.f32 %v2932_v18, %v3060_v22 }
  0x53   : > { %v1605_v31 = vrot.slane %v1507_v19, 1  ;;  %v1607_v60 = vrot.slane %v1508_v56, 1  ;;  %v1848_v61 = vrot.slane %v1750_v25, 2  ;;  %v3122_v62 = vunpack.c.l.bf16 %v240_v55 }
  0x54   : > { %v1469_v63 = vadd.f32 %v1437_v24, %v1401_v32  ;;  %v1470_v0 = vadd.f32 %v1438_v44, %v1402_v58  ;;  %v1849_v1 = vrot.slane %v1751_v59, 2  ;;  %v1851_v3 = vrot.slane %v1752_v29, 2 }
  0x55   : > { %v1606_v4 = vsel %vm485_vm0, %v1604_v57, %v1605_v31  ;;  %v1608_v5 = vsel %vm485_vm0, %v1605_v31, %v1607_v60  ;;  %v3126_v10 = vunpack.c.h.bf16 %v240_v55  ;;  %v3128_v11 = vunpack.c.l.bf16 %v242_v30 }
  0x56   : > { %v1713_v12 = vadd.f32 %v1606_v4, %v1469_v63  ;;  %v1714_v13 = vadd.f32 %v1608_v5, %v1470_v0  ;;  %v1850_v14 = vsel %vm730_vm1, %v1848_v61, %v1849_v1  ;;  %v1852_v15 = vsel %vm730_vm1, %v1849_v1, %v1851_v3 }
  0x57   : > { %v339_v24 = vmul.f32 %v2865_v36, %v2982_v6  ;;  %v340_v26 = vmul.f32 %v2865_v36, %v2984_v16  ;;  %v416_v27 = vmul.f32 %v2869_v38, %v2982_v6  ;;  %v417_v28 = vmul.f32 %v2869_v38, %v2984_v16 }
  0x58   : > { %v1957_v37 = vadd.f32 %v1850_v14, %v1713_v12  ;;  %v1958_v42 = vadd.f32 %v1852_v15, %v1714_v13  ;;  %v418_v43 = vmul.f32 %v2869_v38, %v2987_v20  ;;  %v661_v44 = vmul.f32 %v2872_v39, %v2982_v6 }
  0x59   : > { %v531_v47 = vrot.slane %v416_v27, 1  ;;  %v532_v49 = vrot.slane %v417_v28, 1  ;;  %v662_v50 = vmul.f32 %v2872_v39, %v2984_v16  ;;  %v663_v53 = vmul.f32 %v2872_v39, %v2987_v20 }
  0x5a   : > { %v1988_v54 = vpack.c.bf16 %v1958_v42, %v1957_v37  ;;  %v534_v55 = vrot.slane %v418_v43, 1  ;;  %v776_v19 = vrot.slane %v661_v44, 2  ;;  %v897_v56 = vmul.f32 %v2918_v8, %v2875_v40 }
  0x5b   : > { %v533_v57 = vsel %vm485_vm0, %v531_v47, %v532_v49  ;;  %v777_v25 = vrot.slane %v662_v50, 2  ;;  %v779_v32 = vrot.slane %v663_v53, 2  ;;  %v898_v58 = vmul.f32 %v2936_v23, %v2875_v40 }
  0x5c   : > { %2142 = vmatmul.mubr.bf16.gmra.mrb[4].mxu0 %v1988_v54  ;;  %v535_v59 = vsel %vm485_vm0, %v532_v49, %v534_v55  ;;  %v616_v29 = vadd.f32 %v533_v57, %v339_v24  ;;  %v974_v30 = vmul.f32 %v2918_v8, %v2878_v41  ;;  %v975_v31 = vmul.f32 %v2936_v23, %v2878_v41  ;;  %v2528_v57 = vld [vmem:[%s2822_s23 + $0x30] sm:$0xff]  }
  0x5d   : > { %v617_v60 = vadd.f32 %v535_v59, %v340_v26  ;;  %v778_v61 = vsel %vm730_vm1, %v776_v19, %v777_v25  ;;  %v780_v63 = vsel %vm730_vm1, %v777_v25, %v779_v32  ;;  %v976_v0 = vmul.f32 %v2878_v41, %v2989_v21  ;;  %2151 = vmatprep.mubr.bf16.mxu0 %v2716_v2 }
  0x5e   : > { %v861_v1 = vadd.f32 %v778_v61, %v616_v29  ;;  %v1088_v3 = vrot.slane %v974_v30, 1  ;;  %v1089_v4 = vrot.slane %v975_v31, 1  ;;  %v1218_v5 = vmul.f32 %v2918_v8, %v2886_v45  ;;  %v221_v61 = vld [vmem:[%s2822_s23 + $0x38] sm:$0x1] }
  0x5f   : > { %v862_v12 = vadd.f32 %v780_v63, %v617_v60  ;;  %v1091_v13 = vrot.slane %v976_v0, 1  ;;  %v1219_v14 = vmul.f32 %v2936_v23, %v2886_v45  ;;  %v1220_v15 = vmul.f32 %v2886_v45, %v2989_v21 }
  0x60   : > { %v929_v24 = vadd.f32 %v897_v56, %v861_v1  ;;  %v1090_v26 = vsel %vm485_vm0, %v1088_v3, %v1089_v4  ;;  %v1332_v27 = vrot.slane %v1218_v5, 2  ;;  %v1453_v28 = vmul.f32 %v2948_v48, %v3122_v62 }
  0x61   : > { %v930_v37 = vadd.f32 %v898_v58, %v862_v12  ;;  %v1092_v42 = vsel %vm485_vm0, %v1089_v4, %v1091_v13  ;;  %v1333_v43 = vrot.slane %v1219_v14, 2  ;;  %v1335_v44 = vrot.slane %v1220_v15, 2 }
  0x62   : > { %v1173_v47 = vadd.f32 %v1090_v26, %v929_v24  ;;  %v1454_v49 = vmul.f32 %v2948_v48, %v3126_v10  ;;  %v1530_v50 = vmul.f32 %v2954_v52, %v3122_v62  ;;  %v1531_v53 = vmul.f32 %v2954_v52, %v3126_v10 }
  0x63   : > { %v1174_v54 = vadd.f32 %v1092_v42, %v930_v37  ;;  %v1334_v55 = vsel %vm730_vm1, %v1332_v27, %v1333_v43  ;;  %v1336_v19 = vsel %vm730_vm1, %v1333_v43, %v1335_v44  ;;  %v1532_v56 = vmul.f32 %v2954_v52, %v3128_v11 }
  0x64   : > { %v1417_v25 = vadd.f32 %v1334_v55, %v1173_v47  ;;  %v1644_v32 = vrot.slane %v1530_v50, 1  ;;  %v1645_v58 = vrot.slane %v1531_v53, 1  ;;  %v1774_v59 = vmul.f32 %v2932_v18, %v3122_v62 }
  0x65   : > { %v1418_v29 = vadd.f32 %v1336_v19, %v1174_v54  ;;  %v1647_v30 = vrot.slane %v1532_v56, 1  ;;  %v1775_v31 = vmul.f32 %v2932_v18, %v3126_v10  ;;  %v1776_v60 = vmul.f32 %v2932_v18, %v3128_v11 }
  0x66   : > { %v1485_v63 = vadd.f32 %v1453_v28, %v1417_v25  ;;  %v1646_v0 = vsel %vm485_vm0, %v1644_v32, %v1645_v58  ;;  %v1888_v1 = vrot.slane %v1774_v59, 2  ;;  %v3192_v3 = vunpack.c.l.bf16 %v2528_v57 }
  0x67   : > { %v1486_v4 = vadd.f32 %v1454_v49, %v1418_v29  ;;  %v1648_v5 = vsel %vm485_vm0, %v1645_v58, %v1647_v30  ;;  %v1889_v12 = vrot.slane %v1775_v31, 2  ;;  %v1891_v13 = vrot.slane %v1776_v60, 2 }
  0x68   : > { %v1729_v14 = vadd.f32 %v1646_v0, %v1485_v63  ;;  %v3195_v15 = vunpack.c.h.bf16 %v2528_v57  ;;  %v3197_v24 = vunpack.c.l.bf16 %v221_v61  ;;  %v325_v26 = vmul.f32 %v2858_v33, %v2865_v36 }
  0x69   : > { %v1730_v27 = vadd.f32 %v1648_v5, %v1486_v4  ;;  %v1890_v28 = vsel %vm730_vm1, %v1888_v1, %v1889_v12  ;;  %v1892_v37 = vsel %vm730_vm1, %v1889_v12, %v1891_v13  ;;  %v326_v42 = vmul.f32 %v2860_v34, %v2865_v36 }
  0x6a   : > { %v1973_v43 = vadd.f32 %v1890_v28, %v1729_v14  ;;  %v395_v44 = vmul.f32 %v2858_v33, %v2869_v38  ;;  %v396_v47 = vmul.f32 %v2860_v34, %v2869_v38  ;;  %v397_v49 = vmul.f32 %v2869_v38, %v2862_v35 }
  0x6b   : > { %v1974_v50 = vadd.f32 %v1892_v37, %v1730_v27  ;;  %v640_v53 = vmul.f32 %v2858_v33, %v2872_v39  ;;  %v641_v54 = vmul.f32 %v2860_v34, %v2872_v39  ;;  %v642_v55 = vmul.f32 %v2872_v39, %v2862_v35 }
  0x6c   : > { %v496_v19 = vrot.slane %v395_v44, 1  ;;  %v497_v56 = vrot.slane %v396_v47, 1  ;;  %v499_v57 = vrot.slane %v397_v49, 1  ;;  %v883_v25 = vmul.f32 %v2875_v40, %v3053_v9 }
  0x6d   : > { %v1996_v32 = vpack.c.bf16 %v1974_v50, %v1973_v43  ;;  %v741_v58 = vrot.slane %v640_v53, 2  ;;  %v742_v59 = vrot.slane %v641_v54, 2  ;;  %v744_v29 = vrot.slane %v642_v55, 2 }
  0x6e   : > { %v498_v30 = vsel %vm485_vm0, %v496_v19, %v497_v56  ;;  %v500_v33 = vsel %vm485_vm0, %v497_v56, %v499_v57  ;;  %v884_v34 = vmul.f32 %v2875_v40, %v3058_v17  ;;  %v953_v35 = vmul.f32 %v2878_v41, %v3053_v9 }
  0x6f   : > { %2222 = vmatmul.mubr.bf16.gmra.mrb[4].mxu1 %v1996_v32  ;;  %v602_v31 = vadd.f32 %v498_v30, %v325_v26  ;;  %v603_v60 = vadd.f32 %v500_v33, %v326_v42  ;;  %v743_v61 = vsel %vm730_vm1, %v741_v58, %v742_v59  ;;  %v745_v63 = vsel %vm730_vm1, %v742_v59, %v744_v29  ;;  %v2532_v32 = vld [vmem:[%s2822_s23 + $0x90] sm:$0xff]  }
  0x70   : > { %2231 = vmatprep.mubr.bf16.mxu1 %v2716_v2  ;;  %v954_v0 = vmul.f32 %v2878_v41, %v3058_v17  ;;  %v955_v1 = vmul.f32 %v2878_v41, %v3060_v22  ;;  %v1053_v4 = vrot.slane %v953_v35, 1  ;;  %v1197_v5 = vmul.f32 %v2886_v45, %v3053_v9 }
  0x71   : > { %v847_v12 = vadd.f32 %v743_v61, %v602_v31  ;;  %v848_v13 = vadd.f32 %v745_v63, %v603_v60  ;;  %v1198_v14 = vmul.f32 %v2886_v45, %v3058_v17  ;;  %v1199_v26 = vmul.f32 %v2886_v45, %v3060_v22  ;;  %v245_v60 = vld [vmem:[%s2822_s23 + $0x98] sm:$0x1] }
  0x72   : > { %v1054_v27 = vrot.slane %v954_v0, 1  ;;  %v1056_v28 = vrot.slane %v955_v1, 1  ;;  %v1297_v37 = vrot.slane %v1197_v5, 2  ;;  %v1439_v42 = vmul.f32 %v3192_v3, %v2948_v48 }
  0x73   : > { %v915_v43 = vadd.f32 %v883_v25, %v847_v12  ;;  %v916_v44 = vadd.f32 %v884_v34, %v848_v13  ;;  %v1298_v47 = vrot.slane %v1198_v14, 2  ;;  %v1300_v49 = vrot.slane %v1199_v26, 2 }
  0x74   : > { %v1055_v50 = vsel %vm485_vm0, %v1053_v4, %v1054_v27  ;;  %v1057_v53 = vsel %vm485_vm0, %v1054_v27, %v1056_v28  ;;  %v1440_v54 = vmul.f32 %v3195_v15, %v2948_v48  ;;  %v1509_v55 = vmul.f32 %v3192_v3, %v2954_v52 }
  0x75   : > { %v1159_v19 = vadd.f32 %v1055_v50, %v915_v43  ;;  %v1160_v56 = vadd.f32 %v1057_v53, %v916_v44  ;;  %v1299_v57 = vsel %vm730_vm1, %v1297_v37, %v1298_v47  ;;  %v1301_v25 = vsel %vm730_vm1, %v1298_v47, %v1300_v49 }
  0x76   : > { %v1510_v58 = vmul.f32 %v3195_v15, %v2954_v52  ;;  %v1511_v59 = vmul.f32 %v2954_v52, %v3197_v24  ;;  %v1609_v29 = vrot.slane %v1509_v55, 1  ;;  %v1753_v30 = vmul.f32 %v3192_v3, %v2932_v18 }
  0x77   : > { %v1403_v33 = vadd.f32 %v1299_v57, %v1159_v19  ;;  %v1404_v34 = vadd.f32 %v1301_v25, %v1160_v56  ;;  %v1754_v35 = vmul.f32 %v3195_v15, %v2932_v18  ;;  %v1755_v31 = vmul.f32 %v2932_v18, %v3197_v24 }
  0x78   : > { %v1610_v61 = vrot.slane %v1510_v58, 1  ;;  %v1612_v63 = vrot.slane %v1511_v59, 1  ;;  %v1853_v0 = vrot.slane %v1753_v30, 2  ;;  %v3260_v1 = vunpack.c.l.bf16 %v2532_v32 }
  0x79   : > { %v1471_v4 = vadd.f32 %v1439_v42, %v1403_v33  ;;  %v1472_v5 = vadd.f32 %v1440_v54, %v1404_v34  ;;  %v1854_v12 = vrot.slane %v1754_v35, 2  ;;  %v1856_v13 = vrot.slane %v1755_v31, 2 }
  0x7a   : > { %v1611_v14 = vsel %vm485_vm0, %v1609_v29, %v1610_v61  ;;  %v1613_v26 = vsel %vm485_vm0, %v1610_v61, %v1612_v63  ;;  %v3264_v27 = vunpack.c.h.bf16 %v2532_v32  ;;  %v3266_v28 = vunpack.c.l.bf16 %v245_v60 }
  0x7b   : > { %v1715_v37 = vadd.f32 %v1611_v14, %v1471_v4  ;;  %v1716_v43 = vadd.f32 %v1613_v26, %v1472_v5  ;;  %v1855_v44 = vsel %vm730_vm1, %v1853_v0, %v1854_v12  ;;  %v1857_v47 = vsel %vm730_vm1, %v1854_v12, %v1856_v13 }
  0x7c   : > { %v341_v42 = vmul.f32 %v2918_v8, %v2865_v36  ;;  %v342_v49 = vmul.f32 %v2936_v23, %v2865_v36  ;;  %v419_v50 = vmul.f32 %v2918_v8, %v2869_v38  ;;  %v420_v53 = vmul.f32 %v2936_v23, %v2869_v38 }
  0x7d   : > { %v1959_v54 = vadd.f32 %v1855_v44, %v1715_v37  ;;  %v1960_v55 = vadd.f32 %v1857_v47, %v1716_v43  ;;  %v421_v19 = vmul.f32 %v2869_v38, %v2989_v21  ;;  %v664_v56 = vmul.f32 %v2918_v8, %v2872_v39 }
  0x7e   : > { %v536_v57 = vrot.slane %v419_v50, 1  ;;  %v537_v25 = vrot.slane %v420_v53, 1  ;;  %v665_v32 = vmul.f32 %v2936_v23, %v2872_v39  ;;  %v666_v58 = vmul.f32 %v2872_v39, %v2989_v21 }
  0x7f   : > { %v1989_v59 = vpack.c.bf16 %v1960_v55, %v1959_v54  ;;  %v539_v29 = vrot.slane %v421_v19, 1  ;;  %v781_v30 = vrot.slane %v664_v56, 2  ;;  %v899_v33 = vmul.f32 %v2875_v40, %v3122_v62 }
  0x80   : > { %v538_v34 = vsel %vm485_vm0, %v536_v57, %v537_v25  ;;  %v782_v35 = vrot.slane %v665_v32, 2  ;;  %v784_v31 = vrot.slane %v666_v58, 2  ;;  %v900_v8 = vmul.f32 %v2875_v40, %v3126_v10 }
  0x81   : > { %2152 = vmatmul.mubr.bf16.gmra.mrb[8].mxu0 %v1989_v59  ;;  %v540_v60 = vsel %vm485_vm0, %v537_v25, %v539_v29  ;;  %v618_v23 = vadd.f32 %v538_v34, %v341_v42  ;;  %v977_v21 = vmul.f32 %v2878_v41, %v3122_v62  ;;  %v978_v61 = vmul.f32 %v2878_v41, %v3126_v10  ;;  %v222_v34 = vld [vmem:[%s2822_s23 + $0x3c] sm:$0xff]  }
  0x82   : > { %v619_v63 = vadd.f32 %v540_v60, %v342_v49  ;;  %v783_v0 = vsel %vm730_vm1, %v781_v30, %v782_v35  ;;  %v785_v4 = vsel %vm730_vm1, %v782_v35, %v784_v31  ;;  %v979_v5 = vmul.f32 %v2878_v41, %v3128_v11  ;;  %2161 = vmatprep.mubr.bf16.mxu0 %v2716_v2 }
  0x83   : > { %v863_v12 = vadd.f32 %v783_v0, %v618_v23  ;;  %v1093_v13 = vrot.slane %v977_v21, 1  ;;  %v1094_v14 = vrot.slane %v978_v61, 1  ;;  %v1221_v26 = vmul.f32 %v2886_v45, %v3122_v62  ;;  %v224_v0 = vld [vmem:[%s2822_s23 + $0x44] sm:$0x1] }
  0x84   : > { %v864_v37 = vadd.f32 %v785_v4, %v619_v63  ;;  %v1096_v43 = vrot.slane %v979_v5, 1  ;;  %v1222_v44 = vmul.f32 %v2886_v45, %v3126_v10  ;;  %v1223_v47 = vmul.f32 %v2886_v45, %v3128_v11 }
  0x85   : > { %v931_v42 = vadd.f32 %v899_v33, %v863_v12  ;;  %v1095_v49 = vsel %vm485_vm0, %v1093_v13, %v1094_v14  ;;  %v1337_v50 = vrot.slane %v1221_v26, 2  ;;  %v1455_v53 = vmul.f32 %v3260_v1, %v2948_v48 }
  0x86   : > { %v932_v54 = vadd.f32 %v900_v8, %v864_v37  ;;  %v1097_v55 = vsel %vm485_vm0, %v1094_v14, %v1096_v43  ;;  %v1338_v19 = vrot.slane %v1222_v44, 2  ;;  %v1340_v56 = vrot.slane %v1223_v47, 2 }
  0x87   : > { %v1175_v57 = vadd.f32 %v1095_v49, %v931_v42  ;;  %v1456_v25 = vmul.f32 %v3264_v27, %v2948_v48  ;;  %v1533_v32 = vmul.f32 %v3260_v1, %v2954_v52  ;;  %v1534_v58 = vmul.f32 %v3264_v27, %v2954_v52 }
  0x88   : > { %v1176_v59 = vadd.f32 %v1097_v55, %v932_v54  ;;  %v1339_v29 = vsel %vm730_vm1, %v1337_v50, %v1338_v19  ;;  %v1341_v30 = vsel %vm730_vm1, %v1338_v19, %v1340_v56  ;;  %v1535_v33 = vmul.f32 %v2954_v52, %v3266_v28 }
  0x89   : > { %v1419_v35 = vadd.f32 %v1339_v29, %v1175_v57  ;;  %v1649_v31 = vrot.slane %v1533_v32, 1  ;;  %v1650_v8 = vrot.slane %v1534_v58, 1  ;;  %v1777_v60 = vmul.f32 %v3260_v1, %v2932_v18 }
  0x8a   : > { %v1420_v23 = vadd.f32 %v1341_v30, %v1176_v59  ;;  %v1652_v21 = vrot.slane %v1535_v33, 1  ;;  %v1778_v61 = vmul.f32 %v3264_v27, %v2932_v18  ;;  %v1779_v63 = vmul.f32 %v2932_v18, %v3266_v28 }
  0x8b   : > { %v1487_v4 = vadd.f32 %v1455_v53, %v1419_v35  ;;  %v1651_v5 = vsel %vm485_vm0, %v1649_v31, %v1650_v8  ;;  %v1893_v12 = vrot.slane %v1777_v60, 2  ;;  %v3330_v13 = vunpack.c.l.bf16 %v222_v34 }
  0x8c   : > { %v1488_v14 = vadd.f32 %v1456_v25, %v1420_v23  ;;  %v1653_v26 = vsel %vm485_vm0, %v1650_v8, %v1652_v21  ;;  %v1894_v37 = vrot.slane %v1778_v61, 2  ;;  %v1896_v43 = vrot.slane %v1779_v63, 2 }
  0x8d   : > { %v1731_v44 = vadd.f32 %v1651_v5, %v1487_v4  ;;  %v3333_v47 = vunpack.c.h.bf16 %v222_v34  ;;  %v3335_v42 = vunpack.c.l.bf16 %v224_v0  ;;  %v327_v49 = vmul.f32 %v2865_v36, %v3053_v9 }
  0x8e   : > { %v1732_v50 = vadd.f32 %v1653_v26, %v1488_v14  ;;  %v1895_v53 = vsel %vm730_vm1, %v1893_v12, %v1894_v37  ;;  %v1897_v54 = vsel %vm730_vm1, %v1894_v37, %v1896_v43  ;;  %v328_v55 = vmul.f32 %v2865_v36, %v3058_v17 }
  0x8f   : > { %v1975_v19 = vadd.f32 %v1895_v53, %v1731_v44  ;;  %v398_v56 = vmul.f32 %v2869_v38, %v3053_v9  ;;  %v399_v57 = vmul.f32 %v2869_v38, %v3058_v17  ;;  %v400_v25 = vmul.f32 %v2869_v38, %v3060_v22 }
  0x90   : > { %v1976_v32 = vadd.f32 %v1897_v54, %v1732_v50  ;;  %v643_v58 = vmul.f32 %v2872_v39, %v3053_v9  ;;  %v644_v59 = vmul.f32 %v2872_v39, %v3058_v17  ;;  %v645_v29 = vmul.f32 %v2872_v39, %v3060_v22 }
  0x91   : > { %v501_v30 = vrot.slane %v398_v56, 1  ;;  %v502_v33 = vrot.slane %v399_v57, 1  ;;  %v504_v34 = vrot.slane %v400_v25, 1  ;;  %v885_v35 = vmul.f32 %v3192_v3, %v2875_v40 }
  0x92   : > { %v1997_v31 = vpack.c.bf16 %v1976_v32, %v1975_v19  ;;  %v746_v8 = vrot.slane %v643_v58, 2  ;;  %v747_v60 = vrot.slane %v644_v59, 2  ;;  %v749_v23 = vrot.slane %v645_v29, 2 }
  0x93   : > { %v503_v21 = vsel %vm485_vm0, %v501_v30, %v502_v33  ;;  %v505_v9 = vsel %vm485_vm0, %v502_v33, %v504_v34  ;;  %v886_v17 = vmul.f32 %v3195_v15, %v2875_v40  ;;  %v956_v22 = vmul.f32 %v3192_v3, %v2878_v41 }
  0x94   : > { %2232 = vmatmul.mubr.bf16.gmra.mrb[8].mxu1 %v1997_v31  ;;  %v604_v61 = vadd.f32 %v503_v21, %v327_v49  ;;  %v605_v63 = vadd.f32 %v505_v9, %v328_v55  ;;  %v748_v0 = vsel %vm730_vm1, %v746_v8, %v747_v60  ;;  %v750_v4 = vsel %vm730_vm1, %v747_v60, %v749_v23  ;;  %v246_v31 = vld [vmem:[%s2822_s23 + $0x9c] sm:$0xff]  }
  0x95   : > { %2241 = vmatprep.mubr.bf16.mxu1 %v2716_v2  ;;  %v957_v5 = vmul.f32 %v3195_v15, %v2878_v41  ;;  %v958_v12 = vmul.f32 %v2878_v41, %v3197_v24  ;;  %v1058_v14 = vrot.slane %v956_v22, 1  ;;  %v1200_v26 = vmul.f32 %v3192_v3, %v2886_v45  ;;  %v3396_v22 = vld [vmem:[%s4144_s1 + $0x8] ss:$0 sm:$0xff] }
  0x96   : > { %v849_v37 = vadd.f32 %v748_v0, %v604_v61  ;;  %v850_v43 = vadd.f32 %v750_v4, %v605_v63  ;;  %v1201_v44 = vmul.f32 %v3195_v15, %v2886_v45  ;;  %v1202_v49 = vmul.f32 %v2886_v45, %v3197_v24  ;;  %v248_v0 = vld [vmem:[%s2822_s23 + $0xa4] sm:$0x1] }
  0x97   : > { %v1059_v50 = vrot.slane %v957_v5, 1  ;;  %v1061_v53 = vrot.slane %v958_v12, 1  ;;  %v1302_v54 = vrot.slane %v1200_v26, 2  ;;  %v1441_v55 = vmul.f32 %v2948_v48, %v3330_v13 }
  0x98   : > { %v917_v19 = vadd.f32 %v885_v35, %v849_v37  ;;  %v918_v56 = vadd.f32 %v886_v17, %v850_v43  ;;  %v1303_v57 = vrot.slane %v1201_v44, 2  ;;  %v1305_v25 = vrot.slane %v1202_v49, 2 }
  0x99   : > { %v1060_v32 = vsel %vm485_vm0, %v1058_v14, %v1059_v50  ;;  %v1062_v58 = vsel %vm485_vm0, %v1059_v50, %v1061_v53  ;;  %v1442_v59 = vmul.f32 %v2948_v48, %v3333_v47  ;;  %v1512_v29 = vmul.f32 %v2954_v52, %v3330_v13 }
  0x9a   : > { %v1161_v30 = vadd.f32 %v1060_v32, %v917_v19  ;;  %v1162_v33 = vadd.f32 %v1062_v58, %v918_v56  ;;  %v1304_v34 = vsel %vm730_vm1, %v1302_v54, %v1303_v57  ;;  %v1306_v35 = vsel %vm730_vm1, %v1303_v57, %v1305_v25 }
  0x9b   : > { %v1513_v8 = vmul.f32 %v2954_v52, %v3333_v47  ;;  %v1514_v60 = vmul.f32 %v2954_v52, %v3335_v42  ;;  %v1614_v23 = vrot.slane %v1512_v29, 1  ;;  %v1756_v21 = vmul.f32 %v2932_v18, %v3330_v13 }
  0x9c   : > { %v1405_v9 = vadd.f32 %v1304_v34, %v1161_v30  ;;  %v1406_v17 = vadd.f32 %v1306_v35, %v1162_v33  ;;  %v1757_v61 = vmul.f32 %v3396_v22, %v3333_v47  ;;  %v1758_v63 = vmul.f32 %v3396_v22, %v3335_v42 }
  0x9d   : > { %v1615_v4 = vrot.slane %v1513_v8, 1  ;;  %v1617_v5 = vrot.slane %v1514_v60, 1  ;;  %v1858_v12 = vrot.slane %v1756_v21, 2  ;;  %v3403_v14 = vunpack.c.l.bf16 %v246_v31 }
  0x9e   : > { %v1473_v18 = vadd.f32 %v1441_v55, %v1405_v9  ;;  %v1474_v26 = vadd.f32 %v1442_v59, %v1406_v17  ;;  %v1859_v37 = vrot.slane %v1757_v61, 2  ;;  %v1861_v43 = vrot.slane %v1758_v63, 2 }
  0x9f   : > { %v1616_v44 = vsel %vm485_vm0, %v1614_v23, %v1615_v4  ;;  %v1618_v49 = vsel %vm485_vm0, %v1615_v4, %v1617_v5  ;;  %v3407_v50 = vunpack.c.h.bf16 %v246_v31  ;;  %v3409_v53 = vunpack.c.l.bf16 %v248_v0 }
  0xa0   : > { %v1717_v54 = vadd.f32 %v1616_v44, %v1473_v18  ;;  %v1718_v19 = vadd.f32 %v1618_v49, %v1474_v26  ;;  %v1860_v56 = vsel %vm730_vm1, %v1858_v12, %v1859_v37  ;;  %v1862_v57 = vsel %vm730_vm1, %v1859_v37, %v1861_v43 }
  0xa1   : > { %v343_v55 = vmul.f32 %v2865_v36, %v3122_v62  ;;  %v344_v25 = vmul.f32 %v2865_v36, %v3126_v10  ;;  %v422_v32 = vmul.f32 %v2869_v38, %v3122_v62  ;;  %v423_v58 = vmul.f32 %v2869_v38, %v3126_v10 }
  0xa2   : > { %v1961_v59 = vadd.f32 %v1860_v56, %v1717_v54  ;;  %v1962_v29 = vadd.f32 %v1862_v57, %v1718_v19  ;;  %v424_v30 = vmul.f32 %v2869_v38, %v3128_v11  ;;  %v667_v33 = vmul.f32 %v2872_v39, %v3122_v62 }
  0xa3   : > { %v541_v34 = vrot.slane %v422_v32, 1  ;;  %v542_v35 = vrot.slane %v423_v58, 1  ;;  %v668_v31 = vmul.f32 %v2872_v39, %v3126_v10  ;;  %v669_v8 = vmul.f32 %v2872_v39, %v3128_v11 }
  0xa4   : > { %v1990_v60 = vpack.c.bf16 %v1962_v29, %v1961_v59  ;;  %v544_v23 = vrot.slane %v424_v30, 1  ;;  %v786_v21 = vrot.slane %v667_v33, 2  ;;  %v901_v9 = vmul.f32 %v3260_v1, %v2875_v40 }
  0xa5   : > { %v543_v17 = vsel %vm485_vm0, %v541_v34, %v542_v35  ;;  %v787_v61 = vrot.slane %v668_v31, 2  ;;  %v789_v63 = vrot.slane %v669_v8, 2  ;;  %v902_v62 = vmul.f32 %v3264_v27, %v2875_v40 }
  0xa6   : > { %2162 = vmatmul.mubr.bf16.gmra.mrb[12].mxu0 %v1990_v60  ;;  %v545_v0 = vsel %vm485_vm0, %v542_v35, %v544_v23  ;;  %v620_v10 = vadd.f32 %v543_v17, %v343_v55  ;;  %v980_v11 = vmul.f32 %v3260_v1, %v2878_v41  ;;  %v981_v4 = vmul.f32 %v3264_v27, %v2878_v41  ;;  %v2529_v17 = vld [vmem:[%s2822_s23 + $0x48] sm:$0xff]  }
  0xa7   : > { %v621_v5 = vadd.f32 %v545_v0, %v344_v25  ;;  %v788_v12 = vsel %vm730_vm1, %v786_v21, %v787_v61  ;;  %v790_v18 = vsel %vm730_vm1, %v787_v61, %v789_v63  ;;  %v982_v26 = vmul.f32 %v2878_v41, %v3266_v28  ;;  %2171 = vmatprep.mubr.bf16.mxu0 %v2716_v2 }
  0xa8   : > { %v865_v37 = vadd.f32 %v788_v12, %v620_v10  ;;  %v1098_v43 = vrot.slane %v980_v11, 1  ;;  %v1099_v44 = vrot.slane %v981_v4, 1  ;;  %v1224_v49 = vmul.f32 %v3260_v1, %v2886_v45  ;;  %v227_v12 = vld [vmem:[%s2822_s23 + $0x50] sm:$0x1] }
  0xa9   : > { %v866_v54 = vadd.f32 %v790_v18, %v621_v5  ;;  %v1101_v19 = vrot.slane %v982_v26, 1  ;;  %v1225_v56 = vmul.f32 %v3264_v27, %v2886_v45  ;;  %v1226_v57 = vmul.f32 %v2886_v45, %v3266_v28 }
  0xaa   : > { %v933_v55 = vadd.f32 %v901_v9, %v865_v37  ;;  %v1100_v25 = vsel %vm485_vm0, %v1098_v43, %v1099_v44  ;;  %v1342_v32 = vrot.slane %v1224_v49, 2  ;;  %v1457_v58 = vmul.f32 %v2948_v48, %v3403_v14 }
  0xab   : > { %v934_v59 = vadd.f32 %v902_v62, %v866_v54  ;;  %v1102_v29 = vsel %vm485_vm0, %v1099_v44, %v1101_v19  ;;  %v1343_v30 = vrot.slane %v1225_v56, 2  ;;  %v1345_v33 = vrot.slane %v1226_v57, 2 }
  0xac   : > { %v1177_v34 = vadd.f32 %v1100_v25, %v933_v55  ;;  %v1458_v35 = vmul.f32 %v2948_v48, %v3407_v50  ;;  %v1536_v31 = vmul.f32 %v2954_v52, %v3403_v14  ;;  %v1537_v8 = vmul.f32 %v2954_v52, %v3407_v50 }
  0xad   : > { %v1178_v60 = vadd.f32 %v1102_v29, %v934_v59  ;;  %v1344_v23 = vsel %vm730_vm1, %v1342_v32, %v1343_v30  ;;  %v1346_v21 = vsel %vm730_vm1, %v1343_v30, %v1345_v33  ;;  %v1538_v9 = vmul.f32 %v2954_v52, %v3409_v53 }
  0xae   : > { %v1421_v61 = vadd.f32 %v1344_v23, %v1177_v34  ;;  %v1654_v63 = vrot.slane %v1536_v31, 1  ;;  %v1655_v62 = vrot.slane %v1537_v8, 1  ;;  %v1780_v0 = vmul.f32 %v3396_v22, %v3403_v14 }
  0xaf   : > { %v1422_v10 = vadd.f32 %v1346_v21, %v1178_v60  ;;  %v1657_v11 = vrot.slane %v1538_v9, 1  ;;  %v1781_v4 = vmul.f32 %v3396_v22, %v3407_v50  ;;  %v1782_v5 = vmul.f32 %v3396_v22, %v3409_v53 }
  0xb0   : > { %v1489_v18 = vadd.f32 %v1457_v58, %v1421_v61  ;;  %v1656_v26 = vsel %vm485_vm0, %v1654_v63, %v1655_v62  ;;  %v1898_v37 = vrot.slane %v1780_v0, 2  ;;  %v3473_v43 = vunpack.c.l.bf16 %v2529_v17 }
  0xb1   : > { %v1490_v44 = vadd.f32 %v1458_v35, %v1422_v10  ;;  %v1658_v49 = vsel %vm485_vm0, %v1655_v62, %v1657_v11  ;;  %v1899_v54 = vrot.slane %v1781_v4, 2  ;;  %v1901_v19 = vrot.slane %v1782_v5, 2 }
  0xb2   : > { %v1733_v56 = vadd.f32 %v1656_v26, %v1489_v18  ;;  %v3476_v57 = vunpack.c.h.bf16 %v2529_v17  ;;  %v3478_v55 = vunpack.c.l.bf16 %v227_v12  ;;  %v329_v25 = vmul.f32 %v3192_v3, %v2865_v36 }
  0xb3   : > { %v1734_v32 = vadd.f32 %v1658_v49, %v1490_v44  ;;  %v1900_v58 = vsel %vm730_vm1, %v1898_v37, %v1899_v54  ;;  %v1902_v59 = vsel %vm730_vm1, %v1899_v54, %v1901_v19  ;;  %v330_v29 = vmul.f32 %v3195_v15, %v2865_v36 }
  0xb4   : > { %v1977_v30 = vadd.f32 %v1900_v58, %v1733_v56  ;;  %v401_v33 = vmul.f32 %v3192_v3, %v2869_v38  ;;  %v402_v34 = vmul.f32 %v3195_v15, %v2869_v38  ;;  %v403_v35 = vmul.f32 %v2869_v38, %v3197_v24 }
  0xb5   : > { %v1978_v31 = vadd.f32 %v1902_v59, %v1734_v32  ;;  %v646_v8 = vmul.f32 %v3192_v3, %v2872_v39  ;;  %v647_v60 = vmul.f32 %v3195_v15, %v2872_v39  ;;  %v648_v23 = vmul.f32 %v2872_v39, %v3197_v24 }
  0xb6   : > { %v506_v21 = vrot.slane %v401_v33, 1  ;;  %v507_v9 = vrot.slane %v402_v34, 1  ;;  %v509_v17 = vrot.slane %v403_v35, 1  ;;  %v887_v61 = vmul.f32 %v2875_v40, %v3330_v13 }
  0xb7   : > { %v1998_v63 = vpack.c.bf16 %v1978_v31, %v1977_v30  ;;  %v751_v62 = vrot.slane %v646_v8, 2  ;;  %v752_v0 = vrot.slane %v647_v60, 2  ;;  %v754_v10 = vrot.slane %v648_v23, 2 }
  0xb8   : > { %v508_v11 = vsel %vm485_vm0, %v506_v21, %v507_v9  ;;  %v510_v3 = vsel %vm485_vm0, %v507_v9, %v509_v17  ;;  %v888_v15 = vmul.f32 %v2875_v40, %v3333_v47  ;;  %v959_v24 = vmul.f32 %v2878_v41, %v3330_v13 }
  0xb9   : > { %2242 = vmatmul.mubr.bf16.gmra.mrb[12].mxu1 %v1998_v63  ;;  %v606_v4 = vadd.f32 %v508_v11, %v329_v25  ;;  %v607_v5 = vadd.f32 %v510_v3, %v330_v29  ;;  %v753_v12 = vsel %vm730_vm1, %v751_v62, %v752_v0  ;;  %v755_v18 = vsel %vm730_vm1, %v752_v0, %v754_v10  ;;  %v2533_v63 = vld [vmem:[%s2822_s23 + $0xa8] sm:$0xff]  }
  0xba   : > { %2251 = vmatprep.mubr.bf16.mxu1 %v2716_v2  ;;  %v960_v26 = vmul.f32 %v2878_v41, %v3333_v47  ;;  %v961_v37 = vmul.f32 %v2878_v41, %v3335_v42  ;;  %v1063_v44 = vrot.slane %v959_v24, 1  ;;  %v1203_v49 = vmul.f32 %v2886_v45, %v3330_v13 }
  0xbb   : > { %v851_v54 = vadd.f32 %v753_v12, %v606_v4  ;;  %v852_v19 = vadd.f32 %v755_v18, %v607_v5  ;;  %v1204_v56 = vmul.f32 %v2886_v45, %v3333_v47  ;;  %v1205_v25 = vmul.f32 %v2886_v45, %v3335_v42  ;;  %v251_v5 = vld [vmem:[%s2822_s23 + $0xb0] sm:$0x1] }
  0xbc   : > { %v1064_v32 = vrot.slane %v960_v26, 1  ;;  %v1066_v58 = vrot.slane %v961_v37, 1  ;;  %v1307_v59 = vrot.slane %v1203_v49, 2  ;;  %v1443_v29 = vmul.f32 %v3473_v43, %v2948_v48 }
  0xbd   : > { %v919_v30 = vadd.f32 %v887_v61, %v851_v54  ;;  %v920_v33 = vadd.f32 %v888_v15, %v852_v19  ;;  %v1308_v34 = vrot.slane %v1204_v56, 2  ;;  %v1310_v35 = vrot.slane %v1205_v25, 2 }
  0xbe   : > { %v1065_v31 = vsel %vm485_vm0, %v1063_v44, %v1064_v32  ;;  %v1067_v8 = vsel %vm485_vm0, %v1064_v32, %v1066_v58  ;;  %v1444_v60 = vmul.f32 %v3476_v57, %v2948_v48  ;;  %v1515_v23 = vmul.f32 %v3473_v43, %v2954_v52 }
  0xbf   : > { %v1163_v21 = vadd.f32 %v1065_v31, %v919_v30  ;;  %v1164_v9 = vadd.f32 %v1067_v8, %v920_v33  ;;  %v1309_v17 = vsel %vm730_vm1, %v1307_v59, %v1308_v34  ;;  %v1311_v61 = vsel %vm730_vm1, %v1308_v34, %v1310_v35 }
  0xc0   : > { %v1516_v62 = vmul.f32 %v3476_v57, %v2954_v52  ;;  %v1517_v0 = vmul.f32 %v2954_v52, %v3478_v55  ;;  %v1619_v10 = vrot.slane %v1515_v23, 1  ;;  %v1759_v11 = vmul.f32 %v3396_v22, %v3473_v43 }
  0xc1   : > { %v1407_v3 = vadd.f32 %v1309_v17, %v1163_v21  ;;  %v1408_v15 = vadd.f32 %v1311_v61, %v1164_v9  ;;  %v1760_v24 = vmul.f32 %v3396_v22, %v3476_v57  ;;  %v1761_v4 = vmul.f32 %v3396_v22, %v3478_v55 }
  0xc2   : > { %v1620_v12 = vrot.slane %v1516_v62, 1  ;;  %v1622_v18 = vrot.slane %v1517_v0, 1  ;;  %v1863_v26 = vrot.slane %v1759_v11, 2  ;;  %v3541_v37 = vunpack.c.l.bf16 %v2533_v63 }
  0xc3   : > { %v1475_v44 = vadd.f32 %v1443_v29, %v1407_v3  ;;  %v1476_v49 = vadd.f32 %v1444_v60, %v1408_v15  ;;  %v1864_v54 = vrot.slane %v1760_v24, 2  ;;  %v1866_v19 = vrot.slane %v1761_v4, 2 }
  0xc4   : > { %v1621_v56 = vsel %vm485_vm0, %v1619_v10, %v1620_v12  ;;  %v1623_v25 = vsel %vm485_vm0, %v1620_v12, %v1622_v18  ;;  %v3545_v32 = vunpack.c.h.bf16 %v2533_v63  ;;  %v3547_v58 = vunpack.c.l.bf16 %v251_v5 }
  0xc5   : > { %v1719_v59 = vadd.f32 %v1621_v56, %v1475_v44  ;;  %v1720_v30 = vadd.f32 %v1623_v25, %v1476_v49  ;;  %v1865_v33 = vsel %vm730_vm1, %v1863_v26, %v1864_v54  ;;  %v1867_v34 = vsel %vm730_vm1, %v1864_v54, %v1866_v19 }
  0xc6   : > { %v345_v29 = vmul.f32 %v3260_v1, %v2865_v36  ;;  %v346_v35 = vmul.f32 %v3264_v27, %v2865_v36  ;;  %v425_v31 = vmul.f32 %v3260_v1, %v2869_v38  ;;  %v426_v8 = vmul.f32 %v3264_v27, %v2869_v38 }
  0xc7   : > { %v1963_v60 = vadd.f32 %v1865_v33, %v1719_v59  ;;  %v1964_v23 = vadd.f32 %v1867_v34, %v1720_v30  ;;  %v427_v21 = vmul.f32 %v2869_v38, %v3266_v28  ;;  %v670_v9 = vmul.f32 %v3260_v1, %v2872_v39 }
  0xc8   : > { %v546_v17 = vrot.slane %v425_v31, 1  ;;  %v547_v61 = vrot.slane %v426_v8, 1  ;;  %v671_v63 = vmul.f32 %v3264_v27, %v2872_v39  ;;  %v672_v62 = vmul.f32 %v2872_v39, %v3266_v28 }
  0xc9   : > { %v1991_v0 = vpack.c.bf16 %v1964_v23, %v1963_v60  ;;  %v549_v10 = vrot.slane %v427_v21, 1  ;;  %v791_v11 = vrot.slane %v670_v9, 2  ;;  %v903_v3 = vmul.f32 %v2875_v40, %v3403_v14 }
  0xca   : > { %v548_v15 = vsel %vm485_vm0, %v546_v17, %v547_v61  ;;  %v792_v24 = vrot.slane %v671_v63, 2  ;;  %v794_v4 = vrot.slane %v672_v62, 2  ;;  %v904_v1 = vmul.f32 %v2875_v40, %v3407_v50 }
  0xcb   : > { %2172 = vmatmul.mubr.bf16.gmra.mrb[16].mxu0 %v1991_v0  ;;  %v550_v5 = vsel %vm485_vm0, %v547_v61, %v549_v10  ;;  %v622_v27 = vadd.f32 %v548_v15, %v345_v29  ;;  %v983_v28 = vmul.f32 %v2878_v41, %v3403_v14  ;;  %v984_v12 = vmul.f32 %v2878_v41, %v3407_v50  ;;  %v228_v15 = vld [vmem:[%s2822_s23 + $0x54] sm:$0xff]  }
  0xcc   : > { %v623_v18 = vadd.f32 %v550_v5, %v346_v35  ;;  %v793_v26 = vsel %vm730_vm1, %v791_v11, %v792_v24  ;;  %v795_v44 = vsel %vm730_vm1, %v792_v24, %v794_v4  ;;  %v985_v49 = vmul.f32 %v2878_v41, %v3409_v53  ;;  %2181 = vmatprep.mubr.bf16.mxu0 %v2716_v2 }
  0xcd   : > { %v867_v54 = vadd.f32 %v793_v26, %v622_v27  ;;  %v1103_v19 = vrot.slane %v983_v28, 1  ;;  %v1104_v56 = vrot.slane %v984_v12, 1  ;;  %v1227_v25 = vmul.f32 %v2886_v45, %v3403_v14  ;;  %v230_v26 = vld [vmem:[%s2822_s23 + $0x5c] sm:$0x1] }
  0xce   : > { %v868_v59 = vadd.f32 %v795_v44, %v623_v18  ;;  %v1106_v30 = vrot.slane %v985_v49, 1  ;;  %v1228_v33 = vmul.f32 %v2886_v45, %v3407_v50  ;;  %v1229_v34 = vmul.f32 %v2886_v45, %v3409_v53 }
  0xcf   : > { %v935_v29 = vadd.f32 %v903_v3, %v867_v54  ;;  %v1105_v35 = vsel %vm485_vm0, %v1103_v19, %v1104_v56  ;;  %v1347_v31 = vrot.slane %v1227_v25, 2  ;;  %v1459_v8 = vmul.f32 %v3541_v37, %v2948_v48 }
  0xd0   : > { %v936_v60 = vadd.f32 %v904_v1, %v868_v59  ;;  %v1107_v23 = vsel %vm485_vm0, %v1104_v56, %v1106_v30  ;;  %v1348_v21 = vrot.slane %v1228_v33, 2  ;;  %v1350_v9 = vrot.slane %v1229_v34, 2 }
  0xd1   : > { %v1179_v17 = vadd.f32 %v1105_v35, %v935_v29  ;;  %v1460_v61 = vmul.f32 %v3545_v32, %v2948_v48  ;;  %v1539_v63 = vmul.f32 %v3541_v37, %v2954_v52  ;;  %v1540_v62 = vmul.f32 %v3545_v32, %v2954_v52 }
  0xd2   : > { %v1180_v0 = vadd.f32 %v1107_v23, %v936_v60  ;;  %v1349_v10 = vsel %vm730_vm1, %v1347_v31, %v1348_v21  ;;  %v1351_v11 = vsel %vm730_vm1, %v1348_v21, %v1350_v9  ;;  %v1541_v3 = vmul.f32 %v2954_v52, %v3547_v58 }
  0xd3   : > { %v1423_v24 = vadd.f32 %v1349_v10, %v1179_v17  ;;  %v1659_v4 = vrot.slane %v1539_v63, 1  ;;  %v1660_v1 = vrot.slane %v1540_v62, 1  ;;  %v1783_v5 = vmul.f32 %v3396_v22, %v3541_v37 }
  0xd4   : > { %v1424_v27 = vadd.f32 %v1351_v11, %v1180_v0  ;;  %v1662_v28 = vrot.slane %v1541_v3, 1  ;;  %v1784_v12 = vmul.f32 %v3396_v22, %v3545_v32  ;;  %v1785_v18 = vmul.f32 %v3396_v22, %v3547_v58 }
  0xd5   : > { %v1491_v44 = vadd.f32 %v1459_v8, %v1423_v24  ;;  %v1661_v49 = vsel %vm485_vm0, %v1659_v4, %v1660_v1  ;;  %v1903_v54 = vrot.slane %v1783_v5, 2  ;;  %v3611_v19 = vunpack.c.l.bf16 %v228_v15 }
  0xd6   : > { %v1492_v56 = vadd.f32 %v1460_v61, %v1424_v27  ;;  %v1663_v25 = vsel %vm485_vm0, %v1660_v1, %v1662_v28  ;;  %v1904_v59 = vrot.slane %v1784_v12, 2  ;;  %v1906_v30 = vrot.slane %v1785_v18, 2 }
  0xd7   : > { %v1735_v33 = vadd.f32 %v1661_v49, %v1491_v44  ;;  %v3614_v34 = vunpack.c.h.bf16 %v228_v15  ;;  %v3616_v29 = vunpack.c.l.bf16 %v230_v26  ;;  %v331_v35 = vmul.f32 %v2865_v36, %v3330_v13 }
  0xd8   : > { %v1736_v31 = vadd.f32 %v1663_v25, %v1492_v56  ;;  %v1905_v8 = vsel %vm730_vm1, %v1903_v54, %v1904_v59  ;;  %v1907_v60 = vsel %vm730_vm1, %v1904_v59, %v1906_v30  ;;  %v332_v23 = vmul.f32 %v2865_v36, %v3333_v47 }
  0xd9   : > { %v1979_v21 = vadd.f32 %v1905_v8, %v1735_v33  ;;  %v404_v9 = vmul.f32 %v2869_v38, %v3330_v13  ;;  %v405_v17 = vmul.f32 %v2869_v38, %v3333_v47  ;;  %v406_v61 = vmul.f32 %v2869_v38, %v3335_v42 }
  0xda   : > { %v1980_v63 = vadd.f32 %v1907_v60, %v1736_v31  ;;  %v649_v62 = vmul.f32 %v2872_v39, %v3330_v13  ;;  %v650_v0 = vmul.f32 %v2872_v39, %v3333_v47  ;;  %v651_v10 = vmul.f32 %v2872_v39, %v3335_v42 }
  0xdb   : > { %v511_v11 = vrot.slane %v404_v9, 1  ;;  %v512_v3 = vrot.slane %v405_v17, 1  ;;  %v514_v15 = vrot.slane %v406_v61, 1  ;;  %v889_v24 = vmul.f32 %v3473_v43, %v2875_v40 }
  0xdc   : > { %v1999_v4 = vpack.c.bf16 %v1980_v63, %v1979_v21  ;;  %v756_v1 = vrot.slane %v649_v62, 2  ;;  %v757_v5 = vrot.slane %v650_v0, 2  ;;  %v759_v27 = vrot.slane %v651_v10, 2 }
  0xdd   : > { %v513_v28 = vsel %vm485_vm0, %v511_v11, %v512_v3  ;;  %v515_v13 = vsel %vm485_vm0, %v512_v3, %v514_v15  ;;  %v890_v47 = vmul.f32 %v3476_v57, %v2875_v40  ;;  %v962_v42 = vmul.f32 %v3473_v43, %v2878_v41 }
  0xde   : > { %2252 = vmatmul.mubr.bf16.gmra.mrb[16].mxu1 %v1999_v4  ;;  %v608_v12 = vadd.f32 %v513_v28, %v331_v35  ;;  %v609_v18 = vadd.f32 %v515_v13, %v332_v23  ;;  %v758_v26 = vsel %vm730_vm1, %v756_v1, %v757_v5  ;;  %v760_v44 = vsel %vm730_vm1, %v757_v5, %v759_v27  ;;  %v252_v4 = vld [vmem:[%s2822_s23 + $0xb4] sm:$0xff]  }
  0xdf   : > { %2261 = vmatprep.mubr.bf16.mxu1 %v2716_v2  ;;  %v963_v49 = vmul.f32 %v3476_v57, %v2878_v41  ;;  %v964_v54 = vmul.f32 %v2878_v41, %v3478_v55  ;;  %v1068_v56 = vrot.slane %v962_v42, 1  ;;  %v1206_v25 = vmul.f32 %v3473_v43, %v2886_v45 }
  0xe0   : > { %v853_v59 = vadd.f32 %v758_v26, %v608_v12  ;;  %v854_v30 = vadd.f32 %v760_v44, %v609_v18  ;;  %v1207_v33 = vmul.f32 %v3476_v57, %v2886_v45  ;;  %v1208_v35 = vmul.f32 %v2886_v45, %v3478_v55  ;;  %v254_v18 = vld [vmem:[%s2822_s23 + $0xbc] sm:$0x1] }
  0xe1   : > { %v1069_v31 = vrot.slane %v963_v49, 1  ;;  %v1071_v8 = vrot.slane %v964_v54, 1  ;;  %v1312_v60 = vrot.slane %v1206_v25, 2  ;;  %v1445_v23 = vmul.f32 %v2948_v48, %v3611_v19 }
  0xe2   : > { %v921_v21 = vadd.f32 %v889_v24, %v853_v59  ;;  %v922_v9 = vadd.f32 %v890_v47, %v854_v30  ;;  %v1313_v17 = vrot.slane %v1207_v33, 2  ;;  %v1315_v61 = vrot.slane %v1208_v35, 2 }
  0xe3   : > { %v1070_v63 = vsel %vm485_vm0, %v1068_v56, %v1069_v31  ;;  %v1072_v62 = vsel %vm485_vm0, %v1069_v31, %v1071_v8  ;;  %v1446_v0 = vmul.f32 %v2948_v48, %v3614_v34  ;;  %v1518_v10 = vmul.f32 %v2954_v52, %v3611_v19 }
  0xe4   : > { %v1165_v11 = vadd.f32 %v1070_v63, %v921_v21  ;;  %v1166_v3 = vadd.f32 %v1072_v62, %v922_v9  ;;  %v1314_v15 = vsel %vm730_vm1, %v1312_v60, %v1313_v17  ;;  %v1316_v24 = vsel %vm730_vm1, %v1313_v17, %v1315_v61 }
  0xe5   : > { %v1519_v1 = vmul.f32 %v2954_v52, %v3614_v34  ;;  %v1520_v5 = vmul.f32 %v2954_v52, %v3616_v29  ;;  %v1624_v27 = vrot.slane %v1518_v10, 1  ;;  %v1762_v28 = vmul.f32 %v3396_v22, %v3611_v19 }
  0xe6   : > { %v1409_v13 = vadd.f32 %v1314_v15, %v1165_v11  ;;  %v1410_v47 = vadd.f32 %v1316_v24, %v1166_v3  ;;  %v1763_v42 = vmul.f32 %v3396_v22, %v3614_v34  ;;  %v1764_v12 = vmul.f32 %v3396_v22, %v3616_v29 }
  0xe7   : > { %v1625_v26 = vrot.slane %v1519_v1, 1  ;;  %v1627_v44 = vrot.slane %v1520_v5, 1  ;;  %v1868_v49 = vrot.slane %v1762_v28, 2  ;;  %v3679_v54 = vunpack.c.l.bf16 %v252_v4 }
  0xe8   : > { %v1477_v56 = vadd.f32 %v1445_v23, %v1409_v13  ;;  %v1478_v25 = vadd.f32 %v1446_v0, %v1410_v47  ;;  %v1869_v59 = vrot.slane %v1763_v42, 2  ;;  %v1871_v30 = vrot.slane %v1764_v12, 2 }
  0xe9   : > { %v1626_v33 = vsel %vm485_vm0, %v1624_v27, %v1625_v26  ;;  %v1628_v35 = vsel %vm485_vm0, %v1625_v26, %v1627_v44  ;;  %v3683_v31 = vunpack.c.h.bf16 %v252_v4  ;;  %v3685_v8 = vunpack.c.l.bf16 %v254_v18 }
  0xea   : > { %v1721_v60 = vadd.f32 %v1626_v33, %v1477_v56  ;;  %v1722_v21 = vadd.f32 %v1628_v35, %v1478_v25  ;;  %v1870_v9 = vsel %vm730_vm1, %v1868_v49, %v1869_v59  ;;  %v1872_v17 = vsel %vm730_vm1, %v1869_v59, %v1871_v30 }
  0xeb   : > { %v347_v23 = vmul.f32 %v2865_v36, %v3403_v14  ;;  %v348_v61 = vmul.f32 %v2865_v36, %v3407_v50  ;;  %v428_v63 = vmul.f32 %v2869_v38, %v3403_v14  ;;  %v429_v62 = vmul.f32 %v2869_v38, %v3407_v50 }
  0xec   : > { %v1965_v0 = vadd.f32 %v1870_v9, %v1721_v60  ;;  %v1966_v10 = vadd.f32 %v1872_v17, %v1722_v21  ;;  %v430_v11 = vmul.f32 %v2869_v38, %v3409_v53  ;;  %v673_v3 = vmul.f32 %v2872_v39, %v3403_v14 }
  0xed   : > { %v551_v15 = vrot.slane %v428_v63, 1  ;;  %v552_v24 = vrot.slane %v429_v62, 1  ;;  %v674_v4 = vmul.f32 %v2872_v39, %v3407_v50  ;;  %v675_v1 = vmul.f32 %v2872_v39, %v3409_v53 }
  0xee   : > { %v1992_v5 = vpack.c.bf16 %v1966_v10, %v1965_v0  ;;  %v554_v27 = vrot.slane %v430_v11, 1  ;;  %v796_v28 = vrot.slane %v673_v3, 2  ;;  %v905_v13 = vmul.f32 %v3541_v37, %v2875_v40 }
  0xef   : > { %v553_v47 = vsel %vm485_vm0, %v551_v15, %v552_v24  ;;  %v797_v42 = vrot.slane %v674_v4, 2  ;;  %v799_v12 = vrot.slane %v675_v1, 2  ;;  %v906_v14 = vmul.f32 %v3545_v32, %v2875_v40 }
  0xf0   : > { %2182 = vmatmul.mubr.bf16.gmra.mrb[20].mxu0 %v1992_v5  ;;  %v555_v18 = vsel %vm485_vm0, %v552_v24, %v554_v27  ;;  %v624_v50 = vadd.f32 %v553_v47, %v347_v23  ;;  %v986_v53 = vmul.f32 %v3541_v37, %v2878_v41  ;;  %v987_v26 = vmul.f32 %v3545_v32, %v2878_v41 }
  0xf1   : > { %v625_v44 = vadd.f32 %v555_v18, %v348_v61  ;;  %v798_v49 = vsel %vm730_vm1, %v796_v28, %v797_v42  ;;  %v800_v56 = vsel %vm730_vm1, %v797_v42, %v799_v12  ;;  %v988_v25 = vmul.f32 %v2878_v41, %v3547_v58  ;;  %2191 = vmatprep.mubr.bf16.mxu0 %v2716_v2 }
  0xf2   : > { %v869_v59 = vadd.f32 %v798_v49, %v624_v50  ;;  %v1108_v30 = vrot.slane %v986_v53, 1  ;;  %v1109_v33 = vrot.slane %v987_v26, 1  ;;  %v1230_v35 = vmul.f32 %v3541_v37, %v2886_v45 }
  0xf3   : > { %v870_v60 = vadd.f32 %v800_v56, %v625_v44  ;;  %v1111_v21 = vrot.slane %v988_v25, 1  ;;  %v1231_v9 = vmul.f32 %v3545_v32, %v2886_v45  ;;  %v1232_v17 = vmul.f32 %v2886_v45, %v3547_v58 }
  0xf4   : > { %v937_v23 = vadd.f32 %v905_v13, %v869_v59  ;;  %v1110_v61 = vsel %vm485_vm0, %v1108_v30, %v1109_v33  ;;  %v1352_v63 = vrot.slane %v1230_v35, 2  ;;  %v1461_v62 = vmul.f32 %v2948_v48, %v3679_v54 }
  0xf5   : > { %v938_v0 = vadd.f32 %v906_v14, %v870_v60  ;;  %v1112_v10 = vsel %vm485_vm0, %v1109_v33, %v1111_v21  ;;  %v1353_v11 = vrot.slane %v1231_v9, 2  ;;  %v1355_v3 = vrot.slane %v1232_v17, 2 }
  0xf6   : > { %v1181_v15 = vadd.f32 %v1110_v61, %v937_v23  ;;  %v1462_v24 = vmul.f32 %v2948_v48, %v3683_v31  ;;  %v1542_v4 = vmul.f32 %v2954_v52, %v3679_v54  ;;  %v1543_v1 = vmul.f32 %v2954_v52, %v3683_v31 }
  0xf7   : > { %v1182_v5 = vadd.f32 %v1112_v10, %v938_v0  ;;  %v1354_v27 = vsel %vm730_vm1, %v1352_v63, %v1353_v11  ;;  %v1356_v28 = vsel %vm730_vm1, %v1353_v11, %v1355_v3  ;;  %v1544_v13 = vmul.f32 %v2954_v52, %v3685_v8 }
  0xf8   : > { %v1425_v47 = vadd.f32 %v1354_v27, %v1181_v15  ;;  %v1664_v42 = vrot.slane %v1542_v4, 1  ;;  %v1665_v12 = vrot.slane %v1543_v1, 1  ;;  %v1786_v14 = vmul.f32 %v3396_v22, %v3679_v54 }
  0xf9   : > { %v1426_v18 = vadd.f32 %v1356_v28, %v1182_v5  ;;  %v1667_v50 = vrot.slane %v1544_v13, 1  ;;  %v1787_v53 = vmul.f32 %v3396_v22, %v3683_v31  ;;  %v1788_v26 = vmul.f32 %v3396_v22, %v3685_v8 }
  0xfa   : > { %v1493_v44 = vadd.f32 %v1461_v62, %v1425_v47  ;;  %v1666_v49 = vsel %vm485_vm0, %v1664_v42, %v1665_v12  ;;  %v1908_v56 = vrot.slane %v1786_v14, 2  ;;  %v333_v25 = vmul.f32 %v3473_v43, %v2865_v36 }
  0xfb   : > { %v1494_v59 = vadd.f32 %v1462_v24, %v1426_v18  ;;  %v1668_v30 = vsel %vm485_vm0, %v1665_v12, %v1667_v50  ;;  %v1909_v33 = vrot.slane %v1787_v53, 2  ;;  %v1911_v35 = vrot.slane %v1788_v26, 2 }
  0xfc   : > { %v1737_v60 = vadd.f32 %v1666_v49, %v1493_v44  ;;  %v334_v21 = vmul.f32 %v3476_v57, %v2865_v36  ;;  %v407_v9 = vmul.f32 %v3473_v43, %v2869_v38  ;;  %v408_v17 = vmul.f32 %v3476_v57, %v2869_v38 }
  0xfd   : > { %v1738_v23 = vadd.f32 %v1668_v30, %v1494_v59  ;;  %v1910_v61 = vsel %vm730_vm1, %v1908_v56, %v1909_v33  ;;  %v1912_v63 = vsel %vm730_vm1, %v1909_v33, %v1911_v35  ;;  %v409_v62 = vmul.f32 %v2869_v38, %v3478_v55 }
  0xfe   : > { %v1981_v0 = vadd.f32 %v1910_v61, %v1737_v60  ;;  %v516_v10 = vrot.slane %v407_v9, 1  ;;  %v517_v11 = vrot.slane %v408_v17, 1  ;;  %v652_v3 = vmul.f32 %v3473_v43, %v2872_v39 }
  0xff   : > { %v1982_v15 = vadd.f32 %v1912_v63, %v1738_v23  ;;  %v519_v24 = vrot.slane %v409_v62, 1  ;;  %v653_v4 = vmul.f32 %v3476_v57, %v2872_v39  ;;  %v654_v1 = vmul.f32 %v2872_v39, %v3478_v55 }
 0x100   : > { %v518_v5 = vsel %vm485_vm0, %v516_v10, %v517_v11  ;;  %v761_v27 = vrot.slane %v652_v3, 2  ;;  %v891_v28 = vmul.f32 %v2875_v40, %v3611_v19  ;;  %v892_v13 = vmul.f32 %v2875_v40, %v3614_v34 }
 0x101   : > { %v2000_v47 = vpack.c.bf16 %v1982_v15, %v1981_v0  ;;  %v520_v43 = vsel %vm485_vm0, %v517_v11, %v519_v24  ;;  %v610_v42 = vadd.f32 %v518_v5, %v333_v25  ;;  %v762_v12 = vrot.slane %v653_v4, 2 }
 0x102   : > { %v611_v14 = vadd.f32 %v520_v43, %v334_v21  ;;  %v764_v57 = vrot.slane %v654_v1, 2  ;;  %v965_v55 = vmul.f32 %v2878_v41, %v3611_v19  ;;  %v966_v18 = vmul.f32 %v2878_v41, %v3614_v34 }
 0x103   : > { %2262 = vmatmul.mubr.bf16.gmra.mrb[20].mxu1 %v2000_v47  ;;  %v763_v50 = vsel %vm730_vm1, %v761_v27, %v762_v12  ;;  %v967_v53 = vmul.f32 %v2878_v41, %v3616_v29  ;;  %v1209_v26 = vmul.f32 %v2886_v45, %v3611_v19  ;;  %v1210_v44 = vmul.f32 %v2886_v45, %v3614_v34  ;;  %v2534_v27 = vld [vmem:[%s2822_s23 + $0xc0] sm:$0xff]  }
 0x104   : > { %2271 = vmatprep.mubr.bf16.mxu1 %v2716_v2  ;;  %v765_v49 = vsel %vm730_vm1, %v762_v12, %v764_v57  ;;  %v855_v56 = vadd.f32 %v763_v50, %v610_v42  ;;  %v1073_v25 = vrot.slane %v965_v55, 1  ;;  %v1074_v59 = vrot.slane %v966_v18, 1  ;;  %v257_v55 = vld [vmem:[%s2822_s23 + $0xc8] sm:$0x1] }
 0x105   : > { %v856_v30 = vadd.f32 %v765_v49, %v611_v14  ;;  %v1076_v33 = vrot.slane %v967_v53, 1  ;;  %v1211_v35 = vmul.f32 %v2886_v45, %v3616_v29  ;;  %v1317_v60 = vrot.slane %v1209_v26, 2 }
 0x106   : > { %v923_v21 = vadd.f32 %v891_v28, %v855_v56  ;;  %v1075_v9 = vsel %vm485_vm0, %v1073_v25, %v1074_v59  ;;  %v1318_v17 = vrot.slane %v1210_v44, 2  ;;  %v1447_v23 = vmul.f32 %v2888_v46, %v2948_v48 }
 0x107   : > { %v924_v61 = vadd.f32 %v892_v13, %v856_v30  ;;  %v1077_v63 = vsel %vm485_vm0, %v1074_v59, %v1076_v33  ;;  %v1320_v62 = vrot.slane %v1211_v35, 2  ;;  %v1448_v0 = vmul.f32 %v2896_v51, %v2948_v48 }
 0x108   : > { %v1167_v10 = vadd.f32 %v1075_v9, %v923_v21  ;;  %v1319_v11 = vsel %vm730_vm1, %v1317_v60, %v1318_v17  ;;  %v1521_v3 = vmul.f32 %v2888_v46, %v2954_v52  ;;  %v1522_v15 = vmul.f32 %v2896_v51, %v2954_v52 }
 0x109   : > { %v1168_v24 = vadd.f32 %v1077_v63, %v924_v61  ;;  %v1321_v4 = vsel %vm730_vm1, %v1318_v17, %v1320_v62  ;;  %v1523_v1 = vmul.f32 %v2954_v52, %v2963_v7  ;;  %v1765_v5 = vmul.f32 %v3396_v22, %v2888_v46 }
 0x10a   : > { %v1411_v28 = vadd.f32 %v1319_v11, %v1167_v10  ;;  %v1629_v13 = vrot.slane %v1521_v3, 1  ;;  %v1630_v47 = vrot.slane %v1522_v15, 1  ;;  %v1766_v43 = vmul.f32 %v3396_v22, %v2896_v51 }
 0x10b   : > { %v1412_v42 = vadd.f32 %v1321_v4, %v1168_v24  ;;  %v1632_v12 = vrot.slane %v1523_v1, 1  ;;  %v1767_v14 = vmul.f32 %v3396_v22, %v2963_v7  ;;  %v1873_v57 = vrot.slane %v1765_v5, 2  ;;  %v2133_v18 = vpop.f32.mrb[0].mxu0 }
 0x10c   : > { %v1479_v50 = vadd.f32 %v1447_v23, %v1411_v28  ;;  %v1631_v53 = vsel %vm485_vm0, %v1629_v13, %v1630_v47  ;;  %v1874_v26 = vrot.slane %v1766_v43, 2  ;;  %v3813_v44 = vunpack.c.l.bf16 %v2534_v27  ;;  %2292 = vst [vmem:[%s3815_s11] sm:$0xff] %v2133_v18  ;;  %v2135_v49 = vpop.f32.mrb[1].mxu0 }
 0x10d   : > { %v1480_v56 = vadd.f32 %v1448_v0, %v1412_v42  ;;  %v1633_v22 = vsel %vm485_vm0, %v1630_v47, %v1632_v12  ;;  %v1876_v25 = vrot.slane %v1767_v14, 2  ;;  %v3819_v59 = vunpack.c.h.bf16 %v2534_v27  ;;  %2293 = vst [vmem:[%s3815_s11 + $0x8] sm:$0xff] %v2135_v49  ;;  %v2137_v30 = vpop.f32.mrb[2].mxu0 }
 0x10e   : > { %v1723_v33 = vadd.f32 %v1631_v53, %v1479_v50  ;;  %v1875_v35 = vsel %vm730_vm1, %v1873_v57, %v1874_v26  ;;  %v3823_v60 = vunpack.c.l.bf16 %v257_v55  ;;  %v349_v21 = vmul.f32 %v3541_v37, %v2865_v36  ;;  %2294 = vst [vmem:[%s3815_s11 + $0x10] sm:$0xff] %v2137_v30  ;;  %v2139_v9 = vpop.f32.mrb[3].mxu0 }
 0x10f   : > { %v1724_v17 = vadd.f32 %v1633_v22, %v1480_v56  ;;  %v1877_v23 = vsel %vm730_vm1, %v1874_v26, %v1876_v25  ;;  %v350_v61 = vmul.f32 %v3545_v32, %v2865_v36  ;;  %v431_v63 = vmul.f32 %v3541_v37, %v2869_v38  ;;  %2295 = vst [vmem:[%s3815_s11 + $0x18] sm:$0xff] %v2139_v9 }
 0x110   : > { %v1967_v62 = vadd.f32 %v1875_v35, %v1723_v33  ;;  %v432_v0 = vmul.f32 %v3545_v32, %v2869_v38  ;;  %v433_v10 = vmul.f32 %v2869_v38, %v3547_v58  ;;  %v676_v11 = vmul.f32 %v3541_v37, %v2872_v39 }
 0x111   : > { %v1968_v3 = vadd.f32 %v1877_v23, %v1724_v17  ;;  %v556_v15 = vrot.slane %v431_v63, 1  ;;  %v677_v24 = vmul.f32 %v3545_v32, %v2872_v39  ;;  %v678_v4 = vmul.f32 %v2872_v39, %v3547_v58 }
 0x112   : > { %v557_v1 = vrot.slane %v432_v0, 1  ;;  %v559_v5 = vrot.slane %v433_v10, 1  ;;  %v801_v27 = vrot.slane %v676_v11, 2  ;;  %v907_v28 = vmul.f32 %v2875_v40, %v3679_v54 }
 0x113   : > { %v1993_v13 = vpack.c.bf16 %v1968_v3, %v1967_v62  ;;  %v802_v47 = vrot.slane %v677_v24, 2  ;;  %v804_v43 = vrot.slane %v678_v4, 2  ;;  %v908_v37 = vmul.f32 %v2875_v40, %v3683_v31 }
 0x114   : > { %v558_v42 = vsel %vm485_vm0, %v556_v15, %v557_v1  ;;  %v560_v12 = vsel %vm485_vm0, %v557_v1, %v559_v5  ;;  %v989_v32 = vmul.f32 %v2878_v41, %v3679_v54  ;;  %v990_v58 = vmul.f32 %v2878_v41, %v3683_v31 }
 0x115   : > { %2192 = vmatmul.mubr.bf16.gmra.mrb[24].mxu0 %v1993_v13  ;;  %v626_v14 = vadd.f32 %v558_v42, %v349_v21  ;;  %v627_v57 = vadd.f32 %v560_v12, %v350_v61  ;;  %v803_v55 = vsel %vm730_vm1, %v801_v27, %v802_v47  ;;  %v805_v18 = vsel %vm730_vm1, %v802_v47, %v804_v43 }
 0x116   : > { %v991_v50 = vmul.f32 %v2878_v41, %v3685_v8  ;;  %v1113_v53 = vrot.slane %v989_v32, 1  ;;  %v1114_v26 = vrot.slane %v990_v58, 1  ;;  %v1233_v49 = vmul.f32 %v2886_v45, %v3679_v54  ;;  %2201 = vmatprep.mubr.bf16.mxu0 %v2716_v2 }
 0x117   : > { %v871_v56 = vadd.f32 %v803_v55, %v626_v14  ;;  %v872_v22 = vadd.f32 %v805_v18, %v627_v57  ;;  %v1234_v25 = vmul.f32 %v2886_v45, %v3683_v31  ;;  %v1235_v30 = vmul.f32 %v2886_v45, %v3685_v8 }
 0x118   : > { %v1115_v33 = vsel %vm485_vm0, %v1113_v53, %v1114_v26  ;;  %v1116_v35 = vrot.slane %v991_v50, 1  ;;  %v1357_v21 = vrot.slane %v1233_v49, 2  ;;  %v1463_v9 = vmul.f32 %v3813_v44, %v2948_v48 }
 0x119   : > { %v939_v17 = vadd.f32 %v907_v28, %v871_v56  ;;  %v940_v23 = vadd.f32 %v908_v37, %v872_v22  ;;  %v1358_v61 = vrot.slane %v1234_v25, 2  ;;  %v1360_v63 = vrot.slane %v1235_v30, 2  ;;  %v3882_v28 = vld [vmem:[%s4144_s1 + $0x8] ss:$0 sm:$0xff] }
 0x11a   : > { %v1117_v62 = vsel %vm485_vm0, %v1114_v26, %v1116_v35  ;;  %v1464_v0 = vmul.f32 %v3819_v59, %v2948_v48  ;;  %v1545_v10 = vmul.f32 %v3813_v44, %v2954_v52  ;;  %v1546_v11 = vmul.f32 %v3819_v59, %v2954_v52 }
 0x11b   : > { %v1183_v3 = vadd.f32 %v1115_v33, %v939_v17  ;;  %v1184_v15 = vadd.f32 %v1117_v62, %v940_v23  ;;  %v1359_v24 = vsel %vm730_vm1, %v1357_v21, %v1358_v61  ;;  %v1361_v4 = vsel %vm730_vm1, %v1358_v61, %v1360_v63 }
 0x11c   : > { %v1547_v1 = vmul.f32 %v2954_v52, %v3823_v60  ;;  %v1669_v5 = vrot.slane %v1545_v10, 1  ;;  %v1670_v27 = vrot.slane %v1546_v11, 1  ;;  %v1789_v13 = vmul.f32 %v3882_v28, %v3813_v44 }
 0x11d   : > { %v1427_v47 = vadd.f32 %v1359_v24, %v1183_v3  ;;  %v1428_v43 = vadd.f32 %v1361_v4, %v1184_v15  ;;  %v1790_v37 = vmul.f32 %v3882_v28, %v3819_v59  ;;  %v1791_v42 = vmul.f32 %v3882_v28, %v3823_v60  ;;  %v2213_v12 = vpop.f32.mrb[0].mxu1 }
 0x11e   : > { %v1671_v32 = vsel %vm485_vm0, %v1669_v5, %v1670_v27  ;;  %v1672_v58 = vrot.slane %v1547_v1, 1  ;;  %v1913_v14 = vrot.slane %v1789_v13, 2  ;;  %v335_v57 = vmul.f32 %v2865_v36, %v3611_v19  ;;  %2324 = vst [vmem:[%s3815_s11 + $0x100] sm:$0xff] %v2213_v12  ;;  %v2215_v55 = vpop.f32.mrb[1].mxu1 }
 0x11f   : > { %v1495_v18 = vadd.f32 %v1463_v9, %v1427_v47  ;;  %v1496_v50 = vadd.f32 %v1464_v0, %v1428_v43  ;;  %v1914_v53 = vrot.slane %v1790_v37, 2  ;;  %v1916_v26 = vrot.slane %v1791_v42, 2  ;;  %2325 = vst [vmem:[%s3815_s11 + $0x108] sm:$0xff] %v2215_v55  ;;  %v2217_v49 = vpop.f32.mrb[2].mxu1 }
 0x120   : > { %v1673_v56 = vsel %vm485_vm0, %v1670_v27, %v1672_v58  ;;  %v336_v22 = vmul.f32 %v2865_v36, %v3614_v34  ;;  %v410_v25 = vmul.f32 %v2869_v38, %v3611_v19  ;;  %v411_v30 = vmul.f32 %v2869_v38, %v3614_v34  ;;  %2326 = vst [vmem:[%s3815_s11 + $0x110] sm:$0xff] %v2217_v49  ;;  %v2219_v33 = vpop.f32.mrb[3].mxu1 }
 0x121   : > { %v1739_v35 = vadd.f32 %v1671_v32, %v1495_v18  ;;  %v1740_v21 = vadd.f32 %v1673_v56, %v1496_v50  ;;  %v1915_v9 = vsel %vm730_vm1, %v1913_v14, %v1914_v53  ;;  %v1917_v17 = vsel %vm730_vm1, %v1914_v53, %v1916_v26  ;;  %2327 = vst [vmem:[%s3815_s11 + $0x118] sm:$0xff] %v2219_v33 }
 0x122   : > { %v412_v23 = vmul.f32 %v2869_v38, %v3616_v29  ;;  %v521_v61 = vrot.slane %v410_v25, 1  ;;  %v522_v63 = vrot.slane %v411_v30, 1  ;;  %v655_v62 = vmul.f32 %v2872_v39, %v3611_v19 }
 0x123   : > { %v1983_v0 = vadd.f32 %v1915_v9, %v1739_v35  ;;  %v1984_v10 = vadd.f32 %v1917_v17, %v1740_v21  ;;  %v656_v11 = vmul.f32 %v2872_v39, %v3614_v34  ;;  %v657_v3 = vmul.f32 %v2872_v39, %v3616_v29 }
 0x124   : > { %v523_v15 = vsel %vm485_vm0, %v521_v61, %v522_v63  ;;  %v524_v24 = vrot.slane %v412_v23, 1  ;;  %v766_v4 = vrot.slane %v655_v62, 2  ;;  %v893_v1 = vmul.f32 %v2888_v46, %v2875_v40 }
 0x125   : > { %v2001_v5 = vpack.c.bf16 %v1984_v10, %v1983_v0  ;;  %v612_v27 = vadd.f32 %v523_v15, %v335_v57  ;;  %v767_v13 = vrot.slane %v656_v11, 2  ;;  %v769_v47 = vrot.slane %v657_v3, 2 }
 0x126   : > { %v525_v19 = vsel %vm485_vm0, %v522_v63, %v524_v24  ;;  %v894_v43 = vmul.f32 %v2896_v51, %v2875_v40  ;;  %v968_v34 = vmul.f32 %v2888_v46, %v2878_v41  ;;  %v969_v29 = vmul.f32 %v2896_v51, %v2878_v41  ;;  %v258_v63 = vld [vmem:[%s2822_s23 + $0xcc] sm:$0xff]  }
 0x127   : > { %2272 = vmatmul.mubr.bf16.gmra.mrb[24].mxu1 %v2001_v5  ;;  %v613_v37 = vadd.f32 %v525_v19, %v336_v22  ;;  %v768_v42 = vsel %vm730_vm1, %v766_v4, %v767_v13  ;;  %v770_v12 = vsel %vm730_vm1, %v767_v13, %v769_v47  ;;  %v970_v32 = vmul.f32 %v2878_v41, %v2963_v7 }
 0x128   : > { %2281 = vmatprep.mubr.bf16.mxu1 %v2716_v2  ;;  %v857_v58 = vadd.f32 %v768_v42, %v612_v27  ;;  %v1078_v14 = vrot.slane %v968_v34, 1  ;;  %v1079_v57 = vrot.slane %v969_v29, 1  ;;  %v1212_v55 = vmul.f32 %v2888_v46, %v2886_v45 }
 0x129   : > { %v858_v18 = vadd.f32 %v770_v12, %v613_v37  ;;  %v1081_v50 = vrot.slane %v970_v32, 1  ;;  %v1213_v53 = vmul.f32 %v2896_v51, %v2886_v45  ;;  %v1214_v26 = vmul.f32 %v2886_v45, %v2963_v7 }
 0x12a   : > { %v925_v49 = vadd.f32 %v893_v1, %v857_v58  ;;  %v1080_v56 = vsel %vm485_vm0, %v1078_v14, %v1079_v57  ;;  %v1322_v22 = vrot.slane %v1212_v55, 2  ;;  %v1449_v2 = vmul.f32 %v2948_v48, %v2982_v6  ;;  %v3957_v1 = vld [vmem:[%s2822_s23 + $0xd4] sm:$0x1]  ;;  %s2490_s23 = sshll.u32 %s2706_s15, 13  ;;  %s4097_s15 = scalar_lea.sflag [#allocation3], %s191_s9 }
 0x12b   : > { %v926_v25 = vadd.f32 %v894_v43, %v858_v18  ;;  %v1082_v30 = vsel %vm485_vm0, %v1079_v57, %v1081_v50  ;;  %v1323_v46 = vrot.slane %v1213_v53, 2  ;;  %v1325_v33 = vrot.slane %v1214_v26, 2  ;;  %s4088_s28 = scalar_lea.hbm %s4146_s3, %s2490_s23 }
 0x12c   : > { %v1169_v35 = vadd.f32 %v1080_v56, %v925_v49  ;;  %v1450_v51 = vmul.f32 %v2948_v48, %v2984_v16  ;;  %v1524_v7 = vmul.f32 %v2954_v52, %v2982_v6  ;;  %v1525_v21 = vmul.f32 %v2954_v52, %v2984_v16 }
 0x12d   : > { %v1170_v9 = vadd.f32 %v1082_v30, %v926_v25  ;;  %v1324_v17 = vsel %vm730_vm1, %v1322_v22, %v1323_v46  ;;  %v1326_v23 = vsel %vm730_vm1, %v1323_v46, %v1325_v33  ;;  %v1526_v61 = vmul.f32 %v2954_v52, %v2987_v20 }
 0x12e   : > { %v1413_v62 = vadd.f32 %v1324_v17, %v1169_v35  ;;  %v1634_v0 = vrot.slane %v1524_v7, 1  ;;  %v1635_v10 = vrot.slane %v1525_v21, 1  ;;  %v1768_v11 = vmul.f32 %v3882_v28, %v2982_v6 }
 0x12f   : > { %v1414_v3 = vadd.f32 %v1326_v23, %v1170_v9  ;;  %v1637_v15 = vrot.slane %v1526_v61, 1  ;;  %v1769_v24 = vmul.f32 %v3882_v28, %v2984_v16  ;;  %v1770_v4 = vmul.f32 %v3882_v28, %v2987_v20  ;;  %v2143_v5 = vpop.f32.mrb[4].mxu0 }
 0x130   : > { %v1481_v27 = vadd.f32 %v1449_v2, %v1413_v62  ;;  %v1636_v13 = vsel %vm485_vm0, %v1634_v0, %v1635_v10  ;;  %v1878_v47 = vrot.slane %v1768_v11, 2  ;;  %v3960_v19 = vunpack.c.l.bf16 %v258_v63  ;;  %2296 = vst [vmem:[%s3815_s11 + $0x20] sm:$0xff] %v2143_v5  ;;  %v2145_v6 = vpop.f32.mrb[5].mxu0 }
 0x131   : > { %v1482_v43 = vadd.f32 %v1450_v51, %v1414_v3  ;;  %v1638_v34 = vsel %vm485_vm0, %v1635_v10, %v1637_v15  ;;  %v1879_v16 = vrot.slane %v1769_v24, 2  ;;  %v1881_v29 = vrot.slane %v1770_v4, 2  ;;  %2297 = vst [vmem:[%s3815_s11 + $0x28] sm:$0xff] %v2145_v6  ;;  %v2147_v20 = vpop.f32.mrb[6].mxu0 }
 0x132   : > { %v1725_v37 = vadd.f32 %v1636_v13, %v1481_v27  ;;  %v3965_v42 = vunpack.c.h.bf16 %v258_v63  ;;  %v314_v12 = vunpack.c.l.bf16 %v3957_v1  ;;  %v351_v32 = vmul.f32 %v2865_v36, %v3679_v54  ;;  %2298 = vst [vmem:[%s3815_s11 + $0x30] sm:$0xff] %v2147_v20  ;;  %v2149_v58 = vpop.f32.mrb[7].mxu0 }
 0x133   : > { %v1726_v14 = vadd.f32 %v1638_v34, %v1482_v43  ;;  %v1880_v57 = vsel %vm730_vm1, %v1878_v47, %v1879_v16  ;;  %v1882_v55 = vsel %vm730_vm1, %v1879_v16, %v1881_v29  ;;  %v352_v18 = vmul.f32 %v2865_v36, %v3683_v31  ;;  %2299 = vst [vmem:[%s3815_s11 + $0x38] sm:$0xff] %v2149_v58 }
 0x134   : > { %v1969_v50 = vadd.f32 %v1880_v57, %v1725_v37  ;;  %v434_v53 = vmul.f32 %v2869_v38, %v3679_v54  ;;  %v435_v26 = vmul.f32 %v2869_v38, %v3683_v31  ;;  %v436_v49 = vmul.f32 %v2869_v38, %v3685_v8 }
 0x135   : > { %v1970_v56 = vadd.f32 %v1882_v55, %v1726_v14  ;;  %v679_v22 = vmul.f32 %v2872_v39, %v3679_v54  ;;  %v680_v2 = vmul.f32 %v2872_v39, %v3683_v31  ;;  %v681_v36 = vmul.f32 %v2872_v39, %v3685_v8 }
 0x136   : > { %v561_v25 = vrot.slane %v434_v53, 1  ;;  %v562_v30 = vrot.slane %v435_v26, 1  ;;  %v564_v46 = vrot.slane %v436_v49, 1  ;;  %v909_v33 = vmul.f32 %v3813_v44, %v2875_v40 }
 0x137   : > { %v1994_v35 = vpack.c.bf16 %v1970_v56, %v1969_v50  ;;  %v806_v51 = vrot.slane %v679_v22, 2  ;;  %v807_v7 = vrot.slane %v680_v2, 2  ;;  %v809_v38 = vrot.slane %v681_v36, 2 }
 0x138   : > { %v563_v21 = vsel %vm485_vm0, %v561_v25, %v562_v30  ;;  %v565_v54 = vsel %vm485_vm0, %v562_v30, %v564_v46  ;;  %v910_v31 = vmul.f32 %v3819_v59, %v2875_v40  ;;  %v992_v39 = vmul.f32 %v3813_v44, %v2878_v41 }
 0x139   : > { %2202 = vmatmul.mubr.bf16.gmra.mrb[28].mxu0 %v1994_v35  ;;  %v628_v8 = vadd.f32 %v563_v21, %v351_v32  ;;  %v629_v9 = vadd.f32 %v565_v54, %v352_v18  ;;  %v808_v17 = vsel %vm730_vm1, %v806_v51, %v807_v7  ;;  %v810_v23 = vsel %vm730_vm1, %v807_v7, %v809_v38 }
 0x13a   : > { %v993_v61 = vmul.f32 %v3819_v59, %v2878_v41  ;;  %v994_v63 = vmul.f32 %v2878_v41, %v3823_v60  ;;  %v1118_v62 = vrot.slane %v992_v39, 1  ;;  %v1236_v40 = vmul.f32 %v3813_v44, %v2886_v45 }
 0x13b   : > { %v873_v0 = vadd.f32 %v808_v17, %v628_v8  ;;  %v874_v10 = vadd.f32 %v810_v23, %v629_v9  ;;  %v1237_v11 = vmul.f32 %v3819_v59, %v2886_v45  ;;  %v1238_v3 = vmul.f32 %v2886_v45, %v3823_v60 }
 0x13c   : > { %v1119_v15 = vrot.slane %v993_v61, 1  ;;  %v1121_v24 = vrot.slane %v994_v63, 1  ;;  %v1362_v4 = vrot.slane %v1236_v40, 2  ;;  %v1465_v5 = vmul.f32 %v2948_v48, %v3960_v19 }
 0x13d   : > { %v941_v27 = vadd.f32 %v909_v33, %v873_v0  ;;  %v942_v41 = vadd.f32 %v910_v31, %v874_v10  ;;  %v1363_v13 = vrot.slane %v1237_v11, 2  ;;  %v1365_v47 = vrot.slane %v1238_v3, 2 }
 0x13e   : > { %v1120_v44 = vsel %vm485_vm0, %v1118_v62, %v1119_v15  ;;  %v1122_v6 = vsel %vm485_vm0, %v1119_v15, %v1121_v24  ;;  %v1466_v59 = vmul.f32 %v2948_v48, %v3965_v42  ;;  %v1548_v45 = vmul.f32 %v2954_v52, %v3960_v19 }
 0x13f   : > { %v1185_v60 = vadd.f32 %v1120_v44, %v941_v27  ;;  %v1186_v43 = vadd.f32 %v1122_v6, %v942_v41  ;;  %v1364_v34 = vsel %vm730_vm1, %v1362_v4, %v1363_v13  ;;  %v1366_v16 = vsel %vm730_vm1, %v1363_v13, %v1365_v47 }
 0x140   : > { %v1549_v29 = vmul.f32 %v2954_v52, %v3965_v42  ;;  %v1550_v20 = vmul.f32 %v2954_v52, %v314_v12  ;;  %v1674_v37 = vrot.slane %v1548_v45, 1  ;;  %v1792_v48 = vmul.f32 %v3882_v28, %v3960_v19 }
 0x141   : > { %v1429_v32 = vadd.f32 %v1364_v34, %v1185_v60  ;;  %v1430_v58 = vadd.f32 %v1366_v16, %v1186_v43  ;;  %v1793_v14 = vmul.f32 %v3882_v28, %v3965_v42  ;;  %v1794_v57 = vmul.f32 %v3882_v28, %v314_v12 }
 0x142   : > { %v1675_v55 = vrot.slane %v1549_v29, 1  ;;  %v1677_v18 = vrot.slane %v1550_v20, 1  ;;  %v1918_v50 = vrot.slane %v1792_v48, 2  ;;  %v2223_v53 = vpop.f32.mrb[4].mxu1 }
 0x143   : > { %v1497_v52 = vadd.f32 %v1465_v5, %v1429_v32  ;;  %v1498_v26 = vadd.f32 %v1466_v59, %v1430_v58  ;;  %v1919_v49 = vrot.slane %v1793_v14, 2  ;;  %v1921_v19 = vrot.slane %v1794_v57, 2  ;;  %2328 = vst [vmem:[%s3815_s11 + $0x120] sm:$0xff] %v2223_v53  ;;  %v2225_v56 = vpop.f32.mrb[5].mxu1 }
 0x144   : > { %v1676_v22 = vsel %vm485_vm0, %v1674_v37, %v1675_v55  ;;  %v1678_v42 = vsel %vm485_vm0, %v1675_v55, %v1677_v18  ;;  %2329 = vst [vmem:[%s3815_s11 + $0x128] sm:$0xff] %v2225_v56  ;;  %v2227_v28 = vpop.f32.mrb[6].mxu1 }
 0x145   : > { %v1741_v1 = vadd.f32 %v1676_v22, %v1497_v52  ;;  %v1742_v12 = vadd.f32 %v1678_v42, %v1498_v26  ;;  %v1920_v2 = vsel %vm730_vm1, %v1918_v50, %v1919_v49  ;;  %v1922_v36 = vsel %vm730_vm1, %v1919_v49, %v1921_v19  ;;  %2330 = vst [vmem:[%s3815_s11 + $0x130] sm:$0xff] %v2227_v28  ;;  %v2229_v25 = vpop.f32.mrb[7].mxu1 }
 0x146   : > { %2331 = vst [vmem:[%s3815_s11 + $0x138] sm:$0xff] %v2229_v25 }
 0x147   : > { %v1985_v30 = vadd.f32 %v1920_v2, %v1741_v1  ;;  %v1986_v46 = vadd.f32 %v1922_v36, %v1742_v12 }
 0x149   : > { %v2002_v33 = vpack.c.bf16 %v1986_v46, %v1985_v30 }
 0x14b   : > { %2282 = vmatmul.mubr.bf16.gmra.mrb[28].mxu1 %v2002_v33 }
 0x154   : > { %v2153_v35 = vpop.f32.mrb[8].mxu0 }
 0x155   : > { %2300 = vst [vmem:[%s3815_s11 + $0x40] sm:$0xff] %v2153_v35  ;;  %v2155_v51 = vpop.f32.mrb[9].mxu0 }
 0x156   : > { %2301 = vst [vmem:[%s3815_s11 + $0x48] sm:$0xff] %v2155_v51  ;;  %v2157_v7 = vpop.f32.mrb[10].mxu0 }
 0x157   : > { %2302 = vst [vmem:[%s3815_s11 + $0x50] sm:$0xff] %v2157_v7  ;;  %v2159_v38 = vpop.f32.mrb[11].mxu0 }
 0x158   : > { %2303 = vst [vmem:[%s3815_s11 + $0x58] sm:$0xff] %v2159_v38 }
 0x167   : > { %v2233_v21 = vpop.f32.mrb[8].mxu1 }
 0x168   : > { %2332 = vst [vmem:[%s3815_s11 + $0x140] sm:$0xff] %v2233_v21  ;;  %v2235_v54 = vpop.f32.mrb[9].mxu1 }
 0x169   : > { %2333 = vst [vmem:[%s3815_s11 + $0x148] sm:$0xff] %v2235_v54  ;;  %v2237_v31 = vpop.f32.mrb[10].mxu1 }
 0x16a   : > { %2334 = vst [vmem:[%s3815_s11 + $0x150] sm:$0xff] %v2237_v31  ;;  %v2239_v39 = vpop.f32.mrb[11].mxu1 }
 0x16b   : > { %2335 = vst [vmem:[%s3815_s11 + $0x158] sm:$0xff] %v2239_v39 }
 0x179   : > { %v2163_v8 = vpop.f32.mrb[12].mxu0 }
 0x17a   : > { %2304 = vst [vmem:[%s3815_s11 + $0x60] sm:$0xff] %v2163_v8  ;;  %v2165_v9 = vpop.f32.mrb[13].mxu0 }
 0x17b   : > { %2305 = vst [vmem:[%s3815_s11 + $0x68] sm:$0xff] %v2165_v9  ;;  %v2167_v17 = vpop.f32.mrb[14].mxu0 }
 0x17c   : > { %2306 = vst [vmem:[%s3815_s11 + $0x70] sm:$0xff] %v2167_v17  ;;  %v2169_v23 = vpop.f32.mrb[15].mxu0 }
 0x17d   : > { %2307 = vst [vmem:[%s3815_s11 + $0x78] sm:$0xff] %v2169_v23 }
 0x18c   : > { %v2243_v61 = vpop.f32.mrb[12].mxu1 }
 0x18d   : > { %2336 = vst [vmem:[%s3815_s11 + $0x160] sm:$0xff] %v2243_v61  ;;  %v2245_v63 = vpop.f32.mrb[13].mxu1 }
 0x18e   : > { %2337 = vst [vmem:[%s3815_s11 + $0x168] sm:$0xff] %v2245_v63  ;;  %v2247_v62 = vpop.f32.mrb[14].mxu1 }
 0x18f   : > { %2338 = vst [vmem:[%s3815_s11 + $0x170] sm:$0xff] %v2247_v62  ;;  %v2249_v40 = vpop.f32.mrb[15].mxu1 }
 0x190   : > { %2339 = vst [vmem:[%s3815_s11 + $0x178] sm:$0xff] %v2249_v40 }
 0x19e   : > { %v2173_v0 = vpop.f32.mrb[16].mxu0 }
 0x19f   : > { %2308 = vst [vmem:[%s3815_s11 + $0x80] sm:$0xff] %v2173_v0  ;;  %v2175_v10 = vpop.f32.mrb[17].mxu0 }
 0x1a0   : > { %2309 = vst [vmem:[%s3815_s11 + $0x88] sm:$0xff] %v2175_v10  ;;  %v2177_v11 = vpop.f32.mrb[18].mxu0 }
 0x1a1   : > { %2310 = vst [vmem:[%s3815_s11 + $0x90] sm:$0xff] %v2177_v11  ;;  %v2179_v3 = vpop.f32.mrb[19].mxu0 }
 0x1a2   : > { %2311 = vst [vmem:[%s3815_s11 + $0x98] sm:$0xff] %v2179_v3 }
 0x1b1   : > { %v2253_v15 = vpop.f32.mrb[16].mxu1 }
 0x1b2   : > { %2340 = vst [vmem:[%s3815_s11 + $0x180] sm:$0xff] %v2253_v15  ;;  %v2255_v24 = vpop.f32.mrb[17].mxu1 }
 0x1b3   : > { %2341 = vst [vmem:[%s3815_s11 + $0x188] sm:$0xff] %v2255_v24  ;;  %v2257_v4 = vpop.f32.mrb[18].mxu1 }
 0x1b4   : > { %2342 = vst [vmem:[%s3815_s11 + $0x190] sm:$0xff] %v2257_v4  ;;  %v2259_v5 = vpop.f32.mrb[19].mxu1 }
 0x1b5   : > { %2343 = vst [vmem:[%s3815_s11 + $0x198] sm:$0xff] %v2259_v5 }
 0x1c3   : > { %v2183_v27 = vpop.f32.mrb[20].mxu0 }
 0x1c4   : > { %2312 = vst [vmem:[%s3815_s11 + $0xa0] sm:$0xff] %v2183_v27  ;;  %v2185_v41 = vpop.f32.mrb[21].mxu0 }
 0x1c5   : > { %2313 = vst [vmem:[%s3815_s11 + $0xa8] sm:$0xff] %v2185_v41  ;;  %v2187_v13 = vpop.f32.mrb[22].mxu0 }
 0x1c6   : > { %2314 = vst [vmem:[%s3815_s11 + $0xb0] sm:$0xff] %v2187_v13  ;;  %v2189_v47 = vpop.f32.mrb[23].mxu0 }
 0x1c7   : > { %2315 = vst [vmem:[%s3815_s11 + $0xb8] sm:$0xff] %v2189_v47 }
 0x1d6   : > { %v2263_v44 = vpop.f32.mrb[20].mxu1 }
 0x1d7   : > { %2344 = vst [vmem:[%s3815_s11 + $0x1a0] sm:$0xff] %v2263_v44  ;;  %v2265_v6 = vpop.f32.mrb[21].mxu1 }
 0x1d8   : > { %2345 = vst [vmem:[%s3815_s11 + $0x1a8] sm:$0xff] %v2265_v6  ;;  %v2267_v59 = vpop.f32.mrb[22].mxu1 }
 0x1d9   : > { %2346 = vst [vmem:[%s3815_s11 + $0x1b0] sm:$0xff] %v2267_v59  ;;  %v2269_v45 = vpop.f32.mrb[23].mxu1 }
 0x1da   : > { %2347 = vst [vmem:[%s3815_s11 + $0x1b8] sm:$0xff] %v2269_v45 }
 0x1e8   : > { %v2193_v60 = vpop.f32.mrb[24].mxu0 }
 0x1e9   : > { %2316 = vst [vmem:[%s3815_s11 + $0xc0] sm:$0xff] %v2193_v60  ;;  %v2195_v43 = vpop.f32.mrb[25].mxu0 }
 0x1ea   : > { %2317 = vst [vmem:[%s3815_s11 + $0xc8] sm:$0xff] %v2195_v43  ;;  %v2197_v34 = vpop.f32.mrb[26].mxu0 }
 0x1eb   : > { %2318 = vst [vmem:[%s3815_s11 + $0xd0] sm:$0xff] %v2197_v34  ;;  %v2199_v16 = vpop.f32.mrb[27].mxu0 }
 0x1ec   : > { %2319 = vst [vmem:[%s3815_s11 + $0xd8] sm:$0xff] %v2199_v16 }
 0x1fa   : > { %v2273_v29 = vpop.f32.mrb[24].mxu1 }
 0x1fb   : > { %2348 = vst [vmem:[%s3815_s11 + $0x1c0] sm:$0xff] %v2273_v29  ;;  %v2275_v20 = vpop.f32.mrb[25].mxu1 }
 0x1fc   : > { %2349 = vst [vmem:[%s3815_s11 + $0x1c8] sm:$0xff] %v2275_v20  ;;  %v2277_v37 = vpop.f32.mrb[26].mxu1 }
 0x1fd   : > { %2350 = vst [vmem:[%s3815_s11 + $0x1d0] sm:$0xff] %v2277_v37  ;;  %v2279_v48 = vpop.f32.mrb[27].mxu1 }
 0x1fe   : > { %2351 = vst [vmem:[%s3815_s11 + $0x1d8] sm:$0xff] %v2279_v48 }
 0x20c   : > { %v2203_v32 = vpop.f32.mrb[28].mxu0 }
 0x20d   : > { %2320 = vst [vmem:[%s3815_s11 + $0xe0] sm:$0xff] %v2203_v32  ;;  %v2205_v58 = vpop.f32.mrb[29].mxu0 }
 0x20e   : > { %2321 = vst [vmem:[%s3815_s11 + $0xe8] sm:$0xff] %v2205_v58  ;;  %v2207_v14 = vpop.f32.mrb[30].mxu0 }
 0x20f   : > { %2322 = vst [vmem:[%s3815_s11 + $0xf0] sm:$0xff] %v2207_v14  ;;  %v2209_v57 = vpop.f32.mrb[31].mxu0 }
 0x210   : > { %2323 = vst [vmem:[%s3815_s11 + $0xf8] sm:$0xff] %v2209_v57 }
 0x21e   : > { %v2283_v55 = vpop.f32.mrb[28].mxu1 }
 0x21f   : > { %2352 = vst [vmem:[%s3815_s11 + $0x1e0] sm:$0xff] %v2283_v55  ;;  %v2285_v18 = vpop.f32.mrb[29].mxu1 }
 0x220   : > { %2353 = vst [vmem:[%s3815_s11 + $0x1e8] sm:$0xff] %v2285_v18  ;;  %v2287_v50 = vpop.f32.mrb[30].mxu1 }
 0x221   : > { %2354 = vst [vmem:[%s3815_s11 + $0x1f0] sm:$0xff] %v2287_v50  ;;  %v2289_v53 = vpop.f32.mrb[31].mxu1 }
 0x222   : > { %2355 = vst [vmem:[%s3815_s11 + $0x1f8] sm:$0xff] %v2289_v53 }
 0x223   : > { %2649 = shalt.err (!%p2646_p5)
}
 0x224   : > { %s2650_s6 = scalar_lea.hbm %s4088_s28, 8192  ;;  %s2654_s9 = scalar_lea.hbm %s4146_s3, 16384 }
 0x225   : > { %p2651_p6 = scmp.ne.s32.totalorder %s4088_s28, %s2650_s6  ;;  %p2655_p10 = scmp.lt.u32.totalorder %s4088_s28, %s4146_s3 }
 0x226   : > { %p2656_p11 = scmp.lt.u32.totalorder %s2654_s9, %s2650_s6  ;;  %p2658_p13 = scmp.lt.u32.totalorder %s2650_s6, %s4088_s28 }
 0x227   : > { %p2652_p7 = pnand %p2651_p6, %p2780_p4 }
 0x228   : > { %p2657_p12 = por %p2656_p11, %p2655_p10 }
 0x229   : > { %p2653_p9 = pneg %p2652_p7 }
 0x22a   : > { %p2659_p0 = por %p2658_p13, %p2657_p12 }
 0x22c   : > { %p2660_p1 = pnand %p2659_p0, %p2653_p9 }
 0x22e   : > { %2663 = shalt.err (!%p2660_p1)
}
 0x22f   : > { %s2718_s18 = smov 256   ;;  %s2719_s19 = smov 16  }
 0x230   : > { %2552 = dma.vmem_to_hbm [thread:$0]  (%p2780_p4), %s4090_s21, 8192, %s4088_s28, %s4097_s15, %s2718_s18, %s2718_s18, %s2719_s19  }
 0x231 PF: > { %p2558_p2 = scmp.ge.s32.totalorder %s2714_s17, 2  ;;  %s2387_s23 = sand.u32 1, %s2694_s12  }
 0x232   : > { %s2388_s26 = scalar_lea.sflag [#allocation3], %s2387_s23 }
 0x233   : > { %p2555_p3 = pnand %p2558_p2, %p2787_p8 }
 0x235   : > { %2689 = dma.done.wait (!%p2555_p3), %s2388_s26, 8192  }
 0x236   : > { %2691 = vsyncadd (!%p2555_p3), %s2388_s26, 4294959104  ;;  %s16_s17 = sadd.s32 1, %s2714_s17   ;;  %s4149_s12 = smov %s2698_s13 }
 0x237   : > { %p13_p5 = scmp.ge.s32.totalorder %s16_s17, 4   ;;  %s4150_s13 = smov %s2702_s14 }
 0x238   : > { %s4151_s14 = smov %s2793_s25  ;;  %s4152_s15 = smov %s2710_s16 }
 0x239   : > { %s4153_s16 = smov %s4155_s20  ;;  %15 = sbr.rel (!%p13_p5) target bundleno = 4 (0x4), region = 70 }
 0x240   :  { %2393 = vsyncpa [#allocation3], 1 }
 0x241   :  { %2395 = vsyncpa [#allocation3 + $0x1], 1 }

</bundles_post_ra>
